<compile_context>
chip_gen: v7x
topology: tpu7x:2x2x1
jax: 0.10.0
libtpu: 0.0.40
codegen_flags: <defaults>
</compile_context>

<pallas_src>
import numpy as np
import jax
import jax.numpy as jnp
from jax.experimental import pallas as pl
from jax.experimental.pallas import tpu as pltpu

FOCAL_ALPHA = 0.25
FOCAL_GAMMA = 2.0   # gamma == 2 hard-coded as a squared modulator in the kernel
_EPS = 1e-7


def _round_up(x, m):
    return ((x + m - 1) // m) * m


# ---------------------------------------------------------------------------
# Fused Pallas kernel: focal classification loss + L1/GIoU box losses
# ---------------------------------------------------------------------------
def _criterion_kernel(logits_ref, tgt_ref, qw_ref, text_ref, sbox_ref, tbox_ref,
                      ce_ref, l1_ref, giou_ref, acc_ref):
    outer = pl.program_id(0)
    inner = pl.program_id(1)
    n_inner = pl.num_programs(1)

    @pl.when(inner == 0)
    def _init():
        acc_ref[...] = jnp.zeros_like(acc_ref)

    # Box losses are tiny: compute them once (outer chunk 0 only); zero the
    # other chunk's output slabs so nothing uninitialized is written to HBM.
    @pl.when(jnp.logical_and(inner == 0, outer != 0))
    def _zero_box_slabs():
        l1_ref[...] = jnp.zeros_like(l1_ref)
        giou_ref[...] = jnp.zeros_like(giou_ref)

    @pl.when(jnp.logical_and(inner == 0, outer == 0))
    def _box_losses():
        src = sbox_ref[...].astype(jnp.float32)            # (4, NPAD) cxcywh
        tgt = tbox_ref[...].astype(jnp.float32)

        l1_sum = jnp.sum(jnp.abs(src - tgt))

        def to_xyxy(b):
            cx, cy, w, h = b[0:1, :], b[1:2, :], b[2:3, :], b[3:4, :]
            return cx - 0.5 * w, cy - 0.5 * h, cx + 0.5 * w, cy + 0.5 * h

        sx1, sy1, sx2, sy2 = to_xyxy(src)
        tx1, ty1, tx2, ty2 = to_xyxy(tgt)

        area_s = (sx2 - sx1) * (sy2 - sy1)
        area_t = (tx2 - tx1) * (ty2 - ty1)
        iw = jnp.maximum(jnp.minimum(sx2, tx2) - jnp.maximum(sx1, tx1), 0.0)
        ih = jnp.maximum(jnp.minimum(sy2, ty2) - jnp.maximum(sy1, ty1), 0.0)
        inter = iw * ih
        union = jnp.maximum(area_s + area_t - inter, _EPS)
        iou = inter / union
        ew = jnp.maximum(sx2, tx2) - jnp.minimum(sx1, tx1)
        eh = jnp.maximum(sy2, ty2) - jnp.minimum(sy1, ty1)
        earea = jnp.maximum(jnp.maximum(ew, 0.0) * jnp.maximum(eh, 0.0), _EPS)
        giou = iou - (earea - union) / earea
        giou_sum = jnp.sum(1.0 - giou)

        l1_ref[...] = jnp.full(l1_ref.shape, l1_sum, jnp.float32)
        giou_ref[...] = jnp.full(giou_ref.shape, giou_sum, jnp.float32)

    # ---- focal classification loss over one (B, TQ, C) tile -----------------
    x = logits_ref[...].astype(jnp.float32)                 # (B, TQ, C)
    t = tgt_ref[...].astype(jnp.float32)                    # (B, TQ, C), 0/1
    qw = qw_ref[...].astype(jnp.float32)                    # (B, TQ, 1)

    # numerically stable BCE-with-logits; a single exp per element is shared
    # between the BCE term and the (approx-reciprocal, EUP) sigmoid.
    e = jnp.exp(-jnp.abs(x))
    ce = jnp.maximum(x, 0.0) - x * t + jnp.log1p(e)
    r = pl.reciprocal(1.0 + e, approx=True)
    p = jnp.where(x >= 0.0, r, e * r)                       # == sigmoid(x)

    pt = p * t
    one_m_pt = p + t - (pt + pt)                            # == 1 - p_t
    # alpha_t = a*t + (1-a)*(1-t) folded to two ops:
    alpha_t = (1.0 - FOCAL_ALPHA) + (2.0 * FOCAL_ALPHA - 1.0) * t
    w = alpha_t * (one_m_pt * one_m_pt) * qw                # modulator * q-weight
    # sublane (Q) reduction into the tiny accumulator; text mask is deferred.
    acc_ref[...] += jnp.sum(w * ce, axis=1, keepdims=True)  # (B, 1, C)

    @pl.when(inner == n_inner - 1)
    def _finalize():
        text = text_ref[...].astype(jnp.float32)            # (B, 1, C)
        total = jnp.sum(acc_ref[...] * text)                # tiny reduce / chunk
        ce_ref[...] = jnp.full(ce_ref.shape, total, jnp.float32)


# ---------------------------------------------------------------------------
# Pallas wrapper
# ---------------------------------------------------------------------------
def set_criterion_losses(pred_logits, target_labels, query_weight, text_mask,
                         src_boxes, target_boxes, *, tile_q=None):
    """Returns (focal_loss_sum, l1_sum, giou_sum) as scalars."""
    B, Q, C = pred_logits.shape

    # --- generation-aware VMEM budget ---------------------------------------
    try:
        vmem_cap = int(getattr(pltpu.get_tpu_info(), "vmem_capacity_bytes",
                               64 * 1024 * 1024))
    except Exception:  # pragma: no cover - conservative fallback
        vmem_cap = 64 * 1024 * 1024
    # ~48 MiB on v7x (64 MiB / TC), up to 96 MiB on v5e/v6e (128 MiB).
    vmem_limit = int(min(vmem_cap * 3 // 4, 96 * 1024 * 1024))

    # --- VMEM-aware tile_q selection -----------------------------------------
    l_bytes = pred_logits.dtype.itemsize
    t_bytes = target_labels.dtype.itemsize
    # bytes of double-buffered pipelined input streams per Q row (+ qw f32)
    per_q_row = 2 * B * (C * (l_bytes + t_bytes) + 4)
    fixed = 4 * (B * C + B * 8 * C + 3 * 8 * 128)           # text + acc + outs
    budget = max(vmem_limit // 2 - fixed, per_q_row * 32)
    max_tq = max(32, (budget // per_q_row) // 32 * 32)
    if tile_q is None:
        tile_q = 512
    # multiple of 32 (covers bf16 sublane packing and leaves room for int8)
    tile_q = int(min(int(tile_q), max_tq, _round_up(Q, 32)))
    tile_q = max(32, _round_up(tile_q, 32))

    q_pad0 = _round_up(Q, tile_q)
    num_tiles = q_pad0 // tile_q
    # Always give the "parallel" outer axis two chunks so v7x's second
    # TensorCore has work; padded queries carry zero weight -> no contribution.
    if num_tiles % 2 != 0:
        num_tiles += 1
    n_outer = 2
    n_inner = num_tiles // 2
    q_pad = num_tiles * tile_q

    if q_pad != Q:  # pad tail queries; their query_weight is 0
        pad = ((0, 0), (0, q_pad - Q), (0, 0))
        pred_logits = jnp.pad(pred_logits, pad)
        target_labels = jnp.pad(target_labels, pad)
        query_weight = jnp.pad(query_weight, pad)

    text3 = text_mask.astype(jnp.float32).reshape(B, 1, C)

    # boxes: coordinate-major (4, NPAD), lane-padded with identical dummy boxes
    # (exact zero L1 / zero (1-GIoU) contribution).
    n_boxes = int(src_boxes.shape[0])
    n_pad = _round_up(max(n_boxes, 1), 128)

    def pad_boxes(b):
        b = b.astype(jnp.float32).reshape(-1, 4)
        filler = jnp.broadcast_to(jnp.array([0.5, 0.5, 0.5, 0.5], jnp.float32),
                                  (n_pad - b.shape[0], 4))
        return jnp.transpose(jnp.concatenate([b, filler], axis=0))   # (4, NPAD)

    src_t = pad_boxes(src_boxes)
    tgt_t = pad_boxes(target_boxes)

    q_map = lambda o, i, n=n_inner: (0, o * n + i, 0)

    # TODO(synk): if DMA is still exposed for very short grids, consider
    # pipeline_mode=pl.Buffered(3) on the logits/targets specs.
    ce_parts, l1_parts, giou_parts = pl.pallas_call(
        _criterion_kernel,
        out_shape=(jax.ShapeDtypeStruct((n_outer, 8, 128), jnp.float32),
                   jax.ShapeDtypeStruct((n_outer, 8, 128), jnp.float32),
                   jax.ShapeDtypeStruct((n_outer, 8, 128), jnp.float32)),
        grid_spec=pltpu.PrefetchScalarGridSpec(
            num_scalar_prefetch=0,
            grid=(n_outer, n_inner),
            in_specs=[
                pl.BlockSpec((B, tile_q, C), q_map),               # logits
                pl.BlockSpec((B, tile_q, C), q_map),               # target labels
                pl.BlockSpec((B, tile_q, 1), q_map),               # per-query weight
                pl.BlockSpec((B, 1, C), lambda o, i: (0, 0, 0)),   # text mask
                pl.BlockSpec((4, n_pad), lambda o, i: (0, 0)),     # src boxes
                pl.BlockSpec((4, n_pad), lambda o, i: (0, 0)),     # tgt boxes
            ],
            out_specs=[
                pl.BlockSpec((1, 8, 128), lambda o, i: (o, 0, 0)),
                pl.BlockSpec((1, 8, 128), lambda o, i: (o, 0, 0)),
                pl.BlockSpec((1, 8, 128), lambda o, i: (o, 0, 0)),
            ],
            scratch_shapes=[pltpu.VMEM((B, 1, C), jnp.float32)],
        ),
        compiler_params=pltpu.CompilerParams(
            dimension_semantics=("parallel", "arbitrary"),
            vmem_limit_bytes=vmem_limit),
    )(pred_logits, target_labels, query_weight, text3, src_t, tgt_t)

    ce_sum = jnp.sum(ce_parts[:, 0, 0])     # sum partials across outer chunks
    l1_sum = l1_parts[0, 0, 0]              # only chunk 0 computes box losses
    giou_sum = giou_parts[0, 0, 0]
    return ce_sum, l1_sum, giou_sum


# ---------------------------------------------------------------------------
# Pure-JAX reference (used only for the self-check in __main__)
# ---------------------------------------------------------------------------
def _reference_losses(logits, tgt, qw, text_mask, src_boxes, tgt_boxes):
    x = logits.astype(jnp.float32)
    t = tgt.astype(jnp.float32)
    p = jax.nn.sigmoid(x)
    ce = jnp.maximum(x, 0.0) - x * t + jnp.log1p(jnp.exp(-jnp.abs(x)))
    p_t = p * t + (1.0 - p) * (1.0 - t)
    alpha_t = FOCAL_ALPHA * t + (1.0 - FOCAL_ALPHA) * (1.0 - t)
    focal = alpha_t * ce * (1.0 - p_t) ** 2
    w = qw.astype(jnp.float32) * text_mask.astype(jnp.float32)[:, None, :]
    ce_sum = jnp.sum(focal * w)

    sb = src_boxes.astype(jnp.float32)
    tb = tgt_boxes.astype(jnp.float32)
    l1 = jnp.sum(jnp.abs(sb - tb))

    def xyxy(b):
        cx, cy, w_, h_ = b[:, 0], b[:, 1], b[:, 2], b[:, 3]
        return cx - 0.5 * w_, cy - 0.5 * h_, cx + 0.5 * w_, cy + 0.5 * h_

    sx1, sy1, sx2, sy2 = xyxy(sb)
    tx1, ty1, tx2, ty2 = xyxy(tb)
    a_s = (sx2 - sx1) * (sy2 - sy1)
    a_t = (tx2 - tx1) * (ty2 - ty1)
    iw = jnp.maximum(jnp.minimum(sx2, tx2) - jnp.maximum(sx1, tx1), 0.0)
    ih = jnp.maximum(jnp.minimum(sy2, ty2) - jnp.maximum(sy1, ty1), 0.0)
    inter = iw * ih
    union = jnp.maximum(a_s + a_t - inter, _EPS)
    iou = inter / union
    ew = jnp.maximum(sx2, tx2) - jnp.minimum(sx1, tx1)
    eh = jnp.maximum(sy2, ty2) - jnp.minimum(sy1, ty1)
    ea = jnp.maximum(jnp.maximum(ew, 0.0) * jnp.maximum(eh, 0.0), _EPS)
    giou = iou - (ea - union) / ea
    return ce_sum, l1, jnp.sum(1.0 - giou)


# ---------------------------------------------------------------------------
# SetCriterion (JAX glue around the fused Pallas kernel)
# ---------------------------------------------------------------------------
class SetCriterionPallas:
    def __init__(self, num_classes, matcher, eos_coef, losses, tile_q=None):
        self.num_classes = num_classes
        self.matcher = matcher
        self.eos_coef = float(eos_coef)
        self.losses = losses
        self.tile_q = tile_q

    def preprocess_targets(self, outputs, cls_labels, indices):
        bs, num_queries, num_classes = outputs['pred_logits'].shape
        text_mask = outputs['text_mask']
        matched = np.zeros((bs, num_queries), np.float32)
        # bf16 target labels: values are exactly 0/1, halves HBM traffic of one
        # of the two big streams (bf16 logits are likewise supported as-is).
        target_labels = jnp.zeros((bs, num_queries, num_classes), jnp.bfloat16)
        offset = 0
        for b, (pred_idx, tgt_idx) in enumerate(indices):
            pred_idx = np.asarray(pred_idx)
            tgt_idx = np.asarray(tgt_idx)
            matched[b, pred_idx] = 1.0
            nt = len(tgt_idx)
            batch_tgt = cls_labels[offset:offset + nt]
            target_labels = target_labels.at[b, pred_idx].set(
                batch_tgt[tgt_idx].astype(jnp.bfloat16))
            offset += nt
        # (B, Q, 1): 1.0 for matched queries, eos_coef for unmatched. Replaces
        # the full (B, Q, C) valid_mask stream of the reference implementation
        # (valid_mask == outer(matched, text_mask)).
        query_weight = jnp.asarray(
            np.where(matched > 0.0, 1.0, self.eos_coef)[..., None], jnp.float32)
        return outputs['pred_logits'], target_labels, query_weight, text_mask

    def _gather_boxes(self, outputs, targets, indices):
        batch_idx = np.concatenate(
            [np.full_like(np.asarray(src), i) for i, (src, _) in enumerate(indices)])
        src_idx = np.concatenate([np.asarray(src) for src, _ in indices])
        src_boxes = outputs['pred_boxes'][batch_idx, src_idx]          # (N, 4)

        tgt_boxes_list = []
        for t, (_, i) in zip(targets, indices):
            h, w = t['size']
            scale_fct = jnp.array([w, h, w, h], jnp.float32)
            tgt_boxes_list.append(t['boxes'][np.asarray(i)] / scale_fct)
        target_boxes = jnp.concatenate(tgt_boxes_list, axis=0)         # (N, 4)
        return src_boxes, target_boxes, int(target_boxes.shape[0])

    def forward(self, outputs, targets):
        indices, cls_labels = self.matcher(outputs, targets)
        logits, tgt_labels, qweight, text_mask = self.preprocess_targets(
            outputs, cls_labels, indices)

        if 'boxes' in self.losses:
            src_boxes, target_boxes, num_boxes = self._gather_boxes(
                outputs, targets, indices)
        else:
            src_boxes = target_boxes = jnp.full((1, 4), 0.5, jnp.float32)
            num_boxes = 1

        ce_sum, l1_sum, giou_sum = set_criterion_losses(
            logits, tgt_labels, qweight, text_mask, src_boxes, target_boxes,
            tile_q=self.tile_q)

        losses = {}
        if 'labels' in self.losses:
            B, Q, C = logits.shape
            # TODO(synk): exact FocalLoss normalization is not defined in the
            # provided snippet; we normalize by the number of active text-token
            # positions (same convention as the previous kernel).
            norm = Q * jnp.sum(text_mask.astype(jnp.float32))
            losses['loss_ce'] = ce_sum / jnp.maximum(norm, 1.0)
        if 'boxes' in self.losses:
            nb = float(max(num_boxes, 1))
            losses['loss_bbox'] = l1_sum / nb
            losses['loss_giou'] = giou_sum / nb
        return losses


# TODO(synk): the Hungarian matcher (scipy linear_sum_assignment) has no clean
# Pallas equivalent; a deterministic identity matching stands in for it here.
def identity_matcher(outputs, targets):
    indices = []
    for t in targets:
        nt = t['boxes'].shape[0]
        indices.append((np.arange(nt, dtype=np.int32),
                        np.arange(nt, dtype=np.int32)))
    cls_labels = jnp.concatenate([t['cls_labels'] for t in targets], axis=0)
    return indices, cls_labels


# ---------------------------------------------------------------------------
# Example run
# ---------------------------------------------------------------------------
if __name__ == "__main__":
    key = jax.random.PRNGKey(0)
    # Q=90 with tile_q=32 exercises tail padding (90 -> 96), the odd->even tile
    # forcing (3 -> 4 tiles), two outer chunks and multi-step accumulation.
    B, Q, C = 2, 90, 128
    n_tgts = [3, 2]

    k1, k2, k3, k4 = jax.random.split(key, 4)
    pred_logits = jax.random.normal(k1, (B, Q, C), jnp.float32)
    pred_boxes = jax.random.uniform(k2, (B, Q, 4), jnp.float32,
                                    minval=0.05, maxval=0.95)

    # text mask: different number of active text tokens per batch element
    text_mask = jnp.zeros((B, C), bool)
    text_mask = text_mask.at[0, :40].set(True)
    text_mask = text_mask.at[1, :60].set(True)

    # targets: absolute-pixel cxcywh boxes + image size + multi-hot labels
    targets = []
    kb = jax.random.split(k3, B)
    kl = jax.random.split(k4, B)
    sizes = [(480.0, 640.0), (512.0, 512.0)]
    for b in range(B):
        nt = n_tgts[b]
        h, w = sizes[b]
        boxes = jax.random.uniform(kb[b], (nt, 4), jnp.float32,
                                   minval=0.1, maxval=0.4)
        boxes = boxes * jnp.array([w, h, w, h], jnp.float32)
        labels = (jax.random.uniform(kl[b], (nt, C)) < 0.1).astype(jnp.float32)
        labels = labels * text_mask[b].astype(jnp.float32)
        targets.append({'boxes': boxes, 'size': (h, w), 'cls_labels': labels})

    outputs = {'pred_logits': pred_logits,
               'pred_boxes': pred_boxes,
               'text_mask': text_mask}

    criterion = SetCriterionPallas(num_classes=C, matcher=identity_matcher,
                                   eos_coef=0.1, losses=['labels', 'boxes'],
                                   tile_q=32)

    # --- self-check of the raw kernel sums against a pure-JAX reference -----
    indices, cls_labels = identity_matcher(outputs, targets)
    logits, tgt_labels, qweight, tmask = criterion.preprocess_targets(
        outputs, cls_labels, indices)
    src_b, tgt_b, _ = criterion._gather_boxes(outputs, targets, indices)
    ce_k, l1_k, gi_k = set_criterion_losses(
        logits, tgt_labels, qweight, tmask, src_b, tgt_b, tile_q=32)
    ce_k.block_until_ready(); l1_k.block_until_ready(); gi_k.block_until_ready()
    ce_r, l1_r, gi_r = _reference_losses(logits, tgt_labels, qweight, tmask,
                                         src_b, tgt_b)
    # pl.reciprocal(approx=True) makes the sigmoid (hence the focal modulator)
    # approximate -> loose tolerance on the classification sum.
    np.testing.assert_allclose(float(ce_k), float(ce_r), rtol=5e-2)
    np.testing.assert_allclose(float(l1_k), float(l1_r), rtol=1e-3, atol=1e-5)
    np.testing.assert_allclose(float(gi_k), float(gi_r), rtol=1e-3, atol=1e-5)

    # --- full forward --------------------------------------------------------
    losses = criterion.forward(outputs, targets)
    losses = jax.tree_util.tree_map(jax.block_until_ready, losses)
    for k in sorted(losses):
        val = float(losses[k])
        assert np.isfinite(val), f"{k} is not finite: {val}"
    print("KERNEL_OK")
</pallas_src>

<mosaic_0001>
module attributes {stable_mosaic.version = 11 : i64} {
  func.func @_criterion_kernel(%arg0: i32, %arg1: i32, %arg2: memref<2x32x128xf32, #tpu.memory_space<vmem>>, %arg3: memref<2x32x128xbf16, #tpu.memory_space<vmem>>, %arg4: memref<2x32x1xf32, #tpu.memory_space<vmem>>, %arg5: memref<2x1x128xf32, #tpu.memory_space<vmem>>, %arg6: memref<4x128xf32, #tpu.memory_space<vmem>>, %arg7: memref<4x128xf32, #tpu.memory_space<vmem>>, %arg8: memref<1x8x128xf32, #tpu.memory_space<vmem>>, %arg9: memref<1x8x128xf32, #tpu.memory_space<vmem>>, %arg10: memref<1x8x128xf32, #tpu.memory_space<vmem>>, %arg11: memref<2x1x128xf32, #tpu.memory_space<vmem>>) attributes {dimension_semantics = [#tpu.dimension_semantics<parallel>, #tpu.dimension_semantics<arbitrary>], iteration_bounds = array<i64: 2, 2>, scalar_prefetch = 0 : i64, scratch_operands = 1 : i64, tpu.core_type = #tpu.core_type<tc>, window_params = [{transform_indices = @transform_0, window_bounds = array<i64: 2, 32, 128>}, {transform_indices = @transform_1, window_bounds = array<i64: 2, 32, 128>}, {transform_indices = @transform_2, window_bounds = array<i64: 2, 32, 1>}, {pipeline_mode = #tpu.pipeline_mode<synchronous>, transform_indices = @transform_3, window_bounds = array<i64: 2, 1, 128>}, {pipeline_mode = #tpu.pipeline_mode<synchronous>, transform_indices = @transform_4, window_bounds = array<i64: 4, 128>}, {pipeline_mode = #tpu.pipeline_mode<synchronous>, transform_indices = @transform_5, window_bounds = array<i64: 4, 128>}, {transform_indices = @transform_6, window_bounds = array<i64: 1, 8, 128>}, {transform_indices = @transform_7, window_bounds = array<i64: 1, 8, 128>}, {transform_indices = @transform_8, window_bounds = array<i64: 1, 8, 128>}]} {
    %c0_i32 = arith.constant 0 : i32
    %0 = arith.cmpi eq, %arg1, %c0_i32 : i32
    %1 = arith.extui %0 : i1 to i32
    %c0_i32_0 = arith.constant 0 : i32
    %2 = arith.cmpi ne, %1, %c0_i32_0 : i32
    scf.if %2 {
      %cst_28 = arith.constant 0.000000e+00 : f32
      %55 = vector.broadcast %cst_28 : f32 to vector<2x1x128xf32>
      %c0_29 = arith.constant 0 : index
      %c0_30 = arith.constant 0 : index
      %c0_31 = arith.constant 0 : index
      %56 = vector.load %arg11[%c0_29, %c0_30, %c0_31] : memref<2x1x128xf32, #tpu.memory_space<vmem>>, vector<2x1x128xf32>
      tpu.vector_store %arg11[%c0_29, %c0_30, %c0_31], %55 {strides = array<i32>} : memref<2x1x128xf32, #tpu.memory_space<vmem>>, vector<2x1x128xf32>,
    } else {
    }
    %c0_i32_1 = arith.constant 0 : i32
    %3 = arith.cmpi eq, %arg1, %c0_i32_1 : i32
    %c0_i32_2 = arith.constant 0 : i32
    %4 = arith.cmpi ne, %arg0, %c0_i32_2 : i32
    %5 = arith.andi %3, %4 : i1
    %6 = arith.extui %5 : i1 to i32
    %c0_i32_3 = arith.constant 0 : i32
    %7 = arith.cmpi ne, %6, %c0_i32_3 : i32
    scf.if %7 {
      %cst_28 = arith.constant 0.000000e+00 : f32
      %55 = vector.broadcast %cst_28 : f32 to vector<1x8x128xf32>
      %c0_29 = arith.constant 0 : index
      %c0_30 = arith.constant 0 : index
      %c0_31 = arith.constant 0 : index
      %56 = vector.load %arg9[%c0_29, %c0_30, %c0_31] : memref<1x8x128xf32, #tpu.memory_space<vmem>>, vector<1x8x128xf32>
      tpu.vector_store %arg9[%c0_29, %c0_30, %c0_31], %55 {strides = array<i32>} : memref<1x8x128xf32, #tpu.memory_space<vmem>>, vector<1x8x128xf32>,
      %cst_32 = arith.constant 0.000000e+00 : f32
      %57 = vector.broadcast %cst_32 : f32 to vector<1x8x128xf32>
      %c0_33 = arith.constant 0 : index
      %c0_34 = arith.constant 0 : index
      %c0_35 = arith.constant 0 : index
      %58 = vector.load %arg10[%c0_33, %c0_34, %c0_35] : memref<1x8x128xf32, #tpu.memory_space<vmem>>, vector<1x8x128xf32>
      tpu.vector_store %arg10[%c0_33, %c0_34, %c0_35], %57 {strides = array<i32>} : memref<1x8x128xf32, #tpu.memory_space<vmem>>, vector<1x8x128xf32>,
    } else {
    }
    %c0_i32_4 = arith.constant 0 : i32
    %8 = arith.cmpi eq, %arg1, %c0_i32_4 : i32
    %c0_i32_5 = arith.constant 0 : i32
    %9 = arith.cmpi eq, %arg0, %c0_i32_5 : i32
    %10 = arith.andi %8, %9 : i1
    %11 = arith.extui %10 : i1 to i32
    %c0_i32_6 = arith.constant 0 : i32
    %12 = arith.cmpi ne, %11, %c0_i32_6 : i32
    scf.if %12 {
      %c0_28 = arith.constant 0 : index
      %c0_29 = arith.constant 0 : index
      %55 = vector.load %arg6[%c0_28, %c0_29] : memref<4x128xf32, #tpu.memory_space<vmem>>, vector<4x128xf32>
      %c0_30 = arith.constant 0 : index
      %c0_31 = arith.constant 0 : index
      %56 = vector.load %arg7[%c0_30, %c0_31] : memref<4x128xf32, #tpu.memory_space<vmem>>, vector<4x128xf32>
      %57 = arith.subf %55, %56 : vector<4x128xf32>
      %58 = math.absf %57 : vector<4x128xf32>
      %59 = vector.shape_cast %58 : vector<4x128xf32> to vector<1x4x128xf32>
      %cst_32 = arith.constant dense<0.000000e+00> : vector<1xf32>
      %60 = vector.multi_reduction <add>, %59, %cst_32 [1, 2] : vector<1x4x128xf32> to vector<1xf32>
      %61 = vector.shape_cast %60 : vector<1xf32> to vector<1x1x1xf32>
      %62 = vector.extract %61[0, 0, 0] : f32 from vector<1x1x1xf32>
      %63 = vector.extract_strided_slice %55 {offsets = [0, 0], sizes = [1, 128], strides = [1, 1]} : vector<4x128xf32> to vector<1x128xf32>
      %64 = vector.extract_strided_slice %55 {offsets = [1, 0], sizes = [1, 128], strides = [1, 1]} : vector<4x128xf32> to vector<1x128xf32>
      %65 = vector.extract_strided_slice %55 {offsets = [2, 0], sizes = [1, 128], strides = [1, 1]} : vector<4x128xf32> to vector<1x128xf32>
      %66 = vector.extract_strided_slice %55 {offsets = [3, 0], sizes = [1, 128], strides = [1, 1]} : vector<4x128xf32> to vector<1x128xf32>
      %cst_33 = arith.constant 5.000000e-01 : f32
      %67 = vector.broadcast %cst_33 : f32 to vector<1x128xf32>
      %68 = arith.mulf %67, %65 : vector<1x128xf32>
      %69 = arith.subf %63, %68 : vector<1x128xf32>
      %cst_34 = arith.constant 5.000000e-01 : f32
      %70 = vector.broadcast %cst_34 : f32 to vector<1x128xf32>
      %71 = arith.mulf %70, %66 : vector<1x128xf32>
      %72 = arith.subf %64, %71 : vector<1x128xf32>
      %cst_35 = arith.constant 5.000000e-01 : f32
      %73 = vector.broadcast %cst_35 : f32 to vector<1x128xf32>
      %74 = arith.mulf %73, %65 : vector<1x128xf32>
      %75 = arith.addf %63, %74 : vector<1x128xf32>
      %cst_36 = arith.constant 5.000000e-01 : f32
      %76 = vector.broadcast %cst_36 : f32 to vector<1x128xf32>
      %77 = arith.mulf %76, %66 : vector<1x128xf32>
      %78 = arith.addf %64, %77 : vector<1x128xf32>
      %79 = vector.extract_strided_slice %56 {offsets = [0, 0], sizes = [1, 128], strides = [1, 1]} : vector<4x128xf32> to vector<1x128xf32>
      %80 = vector.extract_strided_slice %56 {offsets = [1, 0], sizes = [1, 128], strides = [1, 1]} : vector<4x128xf32> to vector<1x128xf32>
      %81 = vector.extract_strided_slice %56 {offsets = [2, 0], sizes = [1, 128], strides = [1, 1]} : vector<4x128xf32> to vector<1x128xf32>
      %82 = vector.extract_strided_slice %56 {offsets = [3, 0], sizes = [1, 128], strides = [1, 1]} : vector<4x128xf32> to vector<1x128xf32>
      %cst_37 = arith.constant 5.000000e-01 : f32
      %83 = vector.broadcast %cst_37 : f32 to vector<1x128xf32>
      %84 = arith.mulf %83, %81 : vector<1x128xf32>
      %85 = arith.subf %79, %84 : vector<1x128xf32>
      %cst_38 = arith.constant 5.000000e-01 : f32
      %86 = vector.broadcast %cst_38 : f32 to vector<1x128xf32>
      %87 = arith.mulf %86, %82 : vector<1x128xf32>
      %88 = arith.subf %80, %87 : vector<1x128xf32>
      %cst_39 = arith.constant 5.000000e-01 : f32
      %89 = vector.broadcast %cst_39 : f32 to vector<1x128xf32>
      %90 = arith.mulf %89, %81 : vector<1x128xf32>
      %91 = arith.addf %79, %90 : vector<1x128xf32>
      %cst_40 = arith.constant 5.000000e-01 : f32
      %92 = vector.broadcast %cst_40 : f32 to vector<1x128xf32>
      %93 = arith.mulf %92, %82 : vector<1x128xf32>
      %94 = arith.addf %80, %93 : vector<1x128xf32>
      %95 = arith.subf %75, %69 : vector<1x128xf32>
      %96 = arith.subf %78, %72 : vector<1x128xf32>
      %97 = arith.mulf %95, %96 : vector<1x128xf32>
      %98 = arith.subf %91, %85 : vector<1x128xf32>
      %99 = arith.subf %94, %88 : vector<1x128xf32>
      %100 = arith.mulf %98, %99 : vector<1x128xf32>
      %101 = arith.minimumf %75, %91 : vector<1x128xf32>
      %102 = arith.maximumf %69, %85 : vector<1x128xf32>
      %103 = arith.subf %101, %102 : vector<1x128xf32>
      %cst_41 = arith.constant 0.000000e+00 : f32
      %104 = vector.broadcast %cst_41 : f32 to vector<1x128xf32>
      %105 = arith.maximumf %103, %104 : vector<1x128xf32>
      %106 = arith.minimumf %78, %94 : vector<1x128xf32>
      %107 = arith.maximumf %72, %88 : vector<1x128xf32>
      %108 = arith.subf %106, %107 : vector<1x128xf32>
      %cst_42 = arith.constant 0.000000e+00 : f32
      %109 = vector.broadcast %cst_42 : f32 to vector<1x128xf32>
      %110 = arith.maximumf %108, %109 : vector<1x128xf32>
      %111 = arith.mulf %105, %110 : vector<1x128xf32>
      %112 = arith.addf %97, %100 : vector<1x128xf32>
      %113 = arith.subf %112, %111 : vector<1x128xf32>
      %cst_43 = arith.constant 1.000000e-07 : f32
      %114 = vector.broadcast %cst_43 : f32 to vector<1x128xf32>
      %115 = arith.maximumf %113, %114 : vector<1x128xf32>
      %116 = arith.divf %111, %115 : vector<1x128xf32>
      %117 = arith.maximumf %75, %91 : vector<1x128xf32>
      %118 = arith.minimumf %69, %85 : vector<1x128xf32>
      %119 = arith.subf %117, %118 : vector<1x128xf32>
      %120 = arith.maximumf %78, %94 : vector<1x128xf32>
      %121 = arith.minimumf %72, %88 : vector<1x128xf32>
      %122 = arith.subf %120, %121 : vector<1x128xf32>
      %cst_44 = arith.constant 0.000000e+00 : f32
      %123 = vector.broadcast %cst_44 : f32 to vector<1x128xf32>
      %124 = arith.maximumf %119, %123 : vector<1x128xf32>
      %cst_45 = arith.constant 0.000000e+00 : f32
      %125 = vector.broadcast %cst_45 : f32 to vector<1x128xf32>
      %126 = arith.maximumf %122, %125 : vector<1x128xf32>
      %127 = arith.mulf %124, %126 : vector<1x128xf32>
      %cst_46 = arith.constant 1.000000e-07 : f32
      %128 = vector.broadcast %cst_46 : f32 to vector<1x128xf32>
      %129 = arith.maximumf %127, %128 : vector<1x128xf32>
      %130 = arith.subf %129, %115 : vector<1x128xf32>
      %131 = arith.divf %130, %129 : vector<1x128xf32>
      %132 = arith.subf %116, %131 : vector<1x128xf32>
      %cst_47 = arith.constant 1.000000e+00 : f32
      %133 = vector.broadcast %cst_47 : f32 to vector<1x128xf32>
      %134 = arith.subf %133, %132 : vector<1x128xf32>
      %135 = vector.shape_cast %134 : vector<1x128xf32> to vector<1x1x128xf32>
      %cst_48 = arith.constant dense<0.000000e+00> : vector<1xf32>
      %136 = vector.multi_reduction <add>, %135, %cst_48 [1, 2] : vector<1x1x128xf32> to vector<1xf32>
      %137 = vector.shape_cast %136 : vector<1xf32> to vector<1x1x1xf32>
      %138 = vector.extract %137[0, 0, 0] : f32 from vector<1x1x1xf32>
      %139 = vector.broadcast %62 : f32 to vector<1x8x128xf32>
      %c0_49 = arith.constant 0 : index
      %c0_50 = arith.constant 0 : index
      %c0_51 = arith.constant 0 : index
      %140 = vector.load %arg9[%c0_49, %c0_50, %c0_51] : memref<1x8x128xf32, #tpu.memory_space<vmem>>, vector<1x8x128xf32>
      tpu.vector_store %arg9[%c0_49, %c0_50, %c0_51], %139 {strides = array<i32>} : memref<1x8x128xf32, #tpu.memory_space<vmem>>, vector<1x8x128xf32>,
      %141 = vector.broadcast %138 : f32 to vector<1x8x128xf32>
      %c0_52 = arith.constant 0 : index
      %c0_53 = arith.constant 0 : index
      %c0_54 = arith.constant 0 : index
      %142 = vector.load %arg10[%c0_52, %c0_53, %c0_54] : memref<1x8x128xf32, #tpu.memory_space<vmem>>, vector<1x8x128xf32>
      tpu.vector_store %arg10[%c0_52, %c0_53, %c0_54], %141 {strides = array<i32>} : memref<1x8x128xf32, #tpu.memory_space<vmem>>, vector<1x8x128xf32>,
    } else {
    }
    %c0 = arith.constant 0 : index
    %c0_7 = arith.constant 0 : index
    %c0_8 = arith.constant 0 : index
    %13 = vector.load %arg2[%c0, %c0_7, %c0_8] : memref<2x32x128xf32, #tpu.memory_space<vmem>>, vector<2x32x128xf32>
    %c0_9 = arith.constant 0 : index
    %c0_10 = arith.constant 0 : index
    %c0_11 = arith.constant 0 : index
    %14 = vector.load %arg3[%c0_9, %c0_10, %c0_11] : memref<2x32x128xbf16, #tpu.memory_space<vmem>>, vector<2x32x128xbf16>
    %15 = arith.extf %14 : vector<2x32x128xbf16> to vector<2x32x128xf32>
    %c0_12 = arith.constant 0 : index
    %c0_13 = arith.constant 0 : index
    %c0_14 = arith.constant 0 : index
    %16 = vector.load %arg4[%c0_12, %c0_13, %c0_14] : memref<2x32x1xf32, #tpu.memory_space<vmem>>, vector<2x32x1xf32>
    %17 = math.absf %13 : vector<2x32x128xf32>
    %cst = arith.constant 0.000000e+00 : f32
    %18 = vector.broadcast %cst : f32 to vector<2x32x128xf32>
    %19 = arith.subf %18, %17 : vector<2x32x128xf32>
    %20 = math.exp %19 : vector<2x32x128xf32>
    %cst_15 = arith.constant 0.000000e+00 : f32
    %21 = vector.broadcast %cst_15 : f32 to vector<2x32x128xf32>
    %22 = arith.maximumf %13, %21 : vector<2x32x128xf32>
    %23 = arith.mulf %13, %15 : vector<2x32x128xf32>
    %24 = arith.subf %22, %23 : vector<2x32x128xf32>
    %25 = math.log1p %20 : vector<2x32x128xf32>
    %26 = arith.addf %24, %25 : vector<2x32x128xf32>
    %cst_16 = arith.constant 1.000000e+00 : f32
    %27 = vector.broadcast %cst_16 : f32 to vector<2x32x128xf32>
    %28 = arith.addf %27, %20 : vector<2x32x128xf32>
    %29 = tpu.reciprocal %28 {approx = true} : vector<2x32x128xf32> -> vector<2x32x128xf32>
    %cst_17 = arith.constant 0.000000e+00 : f32
    %30 = vector.broadcast %cst_17 : f32 to vector<2x32x128xf32>
    %31 = arith.cmpf oge, %13, %30 : vector<2x32x128xf32>
    %32 = arith.mulf %20, %29 : vector<2x32x128xf32>
    %33 = arith.select %31, %29, %32 : vector<2x32x128xi1>, vector<2x32x128xf32>
    %34 = arith.mulf %33, %15 : vector<2x32x128xf32>
    %35 = arith.addf %33, %15 : vector<2x32x128xf32>
    %36 = arith.addf %34, %34 : vector<2x32x128xf32>
    %37 = arith.subf %35, %36 : vector<2x32x128xf32>
    %cst_18 = arith.constant -5.000000e-01 : f32
    %38 = vector.broadcast %cst_18 : f32 to vector<2x32x128xf32>
    %39 = arith.mulf %38, %15 : vector<2x32x128xf32>
    %cst_19 = arith.constant 7.500000e-01 : f32
    %40 = vector.broadcast %cst_19 : f32 to vector<2x32x128xf32>
    %41 = arith.addf %40, %39 : vector<2x32x128xf32>
    %42 = arith.mulf %37, %37 : vector<2x32x128xf32>
    %43 = arith.mulf %41, %42 : vector<2x32x128xf32>
    %44 = vector.broadcast %16 : vector<2x32x1xf32> to vector<2x32x128xf32>
    %45 = arith.mulf %43, %44 : vector<2x32x128xf32>
    %c0_20 = arith.constant 0 : index
    %c0_21 = arith.constant 0 : index
    %c0_22 = arith.constant 0 : index
    %46 = vector.load %arg11[%c0_20, %c0_21, %c0_22] : memref<2x1x128xf32, #tpu.memory_space<vmem>>, vector<2x1x128xf32>
    %47 = arith.mulf %45, %26 : vector<2x32x128xf32>
    %cst_23 = arith.constant dense<0.000000e+00> : vector<2x128xf32>
    %48 = vector.multi_reduction <add>, %47, %cst_23 [1] : vector<2x32x128xf32> to vector<2x128xf32>
    %49 = vector.shape_cast %48 : vector<2x128xf32> to vector<2x1x128xf32>
    %50 = arith.addf %46, %49 : vector<2x1x128xf32>
    %c0_24 = arith.constant 0 : index
    %c0_25 = arith.constant 0 : index
    %c0_26 = arith.constant 0 : index
    %51 = vector.load %arg11[%c0_24, %c0_25, %c0_26] : memref<2x1x128xf32, #tpu.memory_space<vmem>>, vector<2x1x128xf32>
    tpu.vector_store %arg11[%c0_24, %c0_25, %c0_26], %50 {strides = array<i32>} : memref<2x1x128xf32, #tpu.memory_space<vmem>>, vector<2x1x128xf32>,
    %c1_i32 = arith.constant 1 : i32
    %52 = arith.cmpi eq, %arg1, %c1_i32 : i32
    %53 = arith.extui %52 : i1 to i32
    %c0_i32_27 = arith.constant 0 : i32
    %54 = arith.cmpi ne, %53, %c0_i32_27 : i32
    scf.if %54 {
      %c0_28 = arith.constant 0 : index
      %c0_29 = arith.constant 0 : index
      %c0_30 = arith.constant 0 : index
      %55 = vector.load %arg5[%c0_28, %c0_29, %c0_30] : memref<2x1x128xf32, #tpu.memory_space<vmem>>, vector<2x1x128xf32>
      %c0_31 = arith.constant 0 : index
      %c0_32 = arith.constant 0 : index
      %c0_33 = arith.constant 0 : index
      %56 = vector.load %arg11[%c0_31, %c0_32, %c0_33] : memref<2x1x128xf32, #tpu.memory_space<vmem>>, vector<2x1x128xf32>
      %57 = arith.mulf %56, %55 : vector<2x1x128xf32>
      %58 = vector.shape_cast %57 : vector<2x1x128xf32> to vector<1x2x1x128xf32>
      %cst_34 = arith.constant dense<0.000000e+00> : vector<1xf32>
      %59 = vector.multi_reduction <add>, %58, %cst_34 [1, 2, 3] : vector<1x2x1x128xf32> to vector<1xf32>
      %60 = vector.shape_cast %59 : vector<1xf32> to vector<1x1x1x1xf32>
      %61 = vector.extract %60[0, 0, 0, 0] : f32 from vector<1x1x1x1xf32>
      %62 = vector.broadcast %61 : f32 to vector<1x8x128xf32>
      %c0_35 = arith.constant 0 : index
      %c0_36 = arith.constant 0 : index
      %c0_37 = arith.constant 0 : index
      %63 = vector.load %arg8[%c0_35, %c0_36, %c0_37] : memref<1x8x128xf32, #tpu.memory_space<vmem>>, vector<1x8x128xf32>
      tpu.vector_store %arg8[%c0_35, %c0_36, %c0_37], %62 {strides = array<i32>} : memref<1x8x128xf32, #tpu.memory_space<vmem>>, vector<1x8x128xf32>,
    } else {
    }
    return
  }
  func.func @transform_0(%arg0: i32, %arg1: i32) -> (i32, i32, i32) {
    %c2_i32 = arith.constant 2 : i32
    %0 = arith.muli %arg0, %c2_i32 : i32
    %1 = arith.addi %0, %arg1 : i32
    %c0_i32 = arith.constant 0 : i32
    %c0_i32_0 = arith.constant 0 : i32
    %c0_i32_1 = arith.constant 0 : i32
    return %c0_i32, %1, %c0_i32_0 : i32, i32, i32
  }
  func.func @transform_1(%arg0: i32, %arg1: i32) -> (i32, i32, i32) {
    %c2_i32 = arith.constant 2 : i32
    %0 = arith.muli %arg0, %c2_i32 : i32
    %1 = arith.addi %0, %arg1 : i32
    %c0_i32 = arith.constant 0 : i32
    %c0_i32_0 = arith.constant 0 : i32
    %c0_i32_1 = arith.constant 0 : i32
    return %c0_i32, %1, %c0_i32_0 : i32, i32, i32
  }
  func.func @transform_2(%arg0: i32, %arg1: i32) -> (i32, i32, i32) {
    %c2_i32 = arith.constant 2 : i32
    %0 = arith.muli %arg0, %c2_i32 : i32
    %1 = arith.addi %0, %arg1 : i32
    %c0_i32 = arith.constant 0 : i32
    %c0_i32_0 = arith.constant 0 : i32
    %c0_i32_1 = arith.constant 0 : i32
    return %c0_i32, %1, %c0_i32_0 : i32, i32, i32
  }
  func.func @transform_3(%arg0: i32, %arg1: i32) -> (i32, i32, i32) {
    %c0_i32 = arith.constant 0 : i32
    %c0_i32_0 = arith.constant 0 : i32
    %c0_i32_1 = arith.constant 0 : i32
    %c0_i32_2 = arith.constant 0 : i32
    return %c0_i32, %c0_i32_0, %c0_i32_1 : i32, i32, i32
  }
  func.func @transform_4(%arg0: i32, %arg1: i32) -> (i32, i32) {
    %c0_i32 = arith.constant 0 : i32
    %c0_i32_0 = arith.constant 0 : i32
    %c0_i32_1 = arith.constant 0 : i32
    return %c0_i32, %c0_i32_0 : i32, i32
  }
  func.func @transform_5(%arg0: i32, %arg1: i32) -> (i32, i32) {
    %c0_i32 = arith.constant 0 : i32
    %c0_i32_0 = arith.constant 0 : i32
    %c0_i32_1 = arith.constant 0 : i32
    return %c0_i32, %c0_i32_0 : i32, i32
  }
  func.func @transform_6(%arg0: i32, %arg1: i32) -> (i32, i32, i32) {
    %c0_i32 = arith.constant 0 : i32
    %c0_i32_0 = arith.constant 0 : i32
    %c0_i32_1 = arith.constant 0 : i32
    return %arg0, %c0_i32, %c0_i32_0 : i32, i32, i32
  }
  func.func @transform_7(%arg0: i32, %arg1: i32) -> (i32, i32, i32) {
    %c0_i32 = arith.constant 0 : i32
    %c0_i32_0 = arith.constant 0 : i32
    %c0_i32_1 = arith.constant 0 : i32
    return %arg0, %c0_i32, %c0_i32_0 : i32, i32, i32
  }
  func.func @transform_8(%arg0: i32, %arg1: i32) -> (i32, i32, i32) {
    %c0_i32 = arith.constant 0 : i32
    %c0_i32_0 = arith.constant 0 : i32
    %c0_i32_1 = arith.constant 0 : i32
    return %arg0, %c0_i32, %c0_i32_0 : i32, i32, i32
  }
}

</mosaic_0001>

<bundles_post_ra>
// kernel: tpu_custom_call.1
= control target key start
LH: loop header
LB: loop body
LE: loop exit
PB: predicated region body
PF: predicated region fallthrough
CT: control target
= control target key end

     0   :  { %s2444_s0 = inlined_call_operand.vmem [shape: f32[2,128,128], index: 0, kind: input, shape index: {}]   ;;  %s2445_s1 = inlined_call_operand.hbm [shape: bf16[2,128,128], index: 1, kind: input, shape index: {}]   ;;  %s2446_s2 = inlined_call_operand.vmem [shape: f32[2,128,1], index: 2, kind: input, shape index: {}]   ;;  %s2447_s3 = inlined_call_operand.vmem [shape: f32[2,1,128], index: 3, kind: input, shape index: {}]   ;;  %s2448_s4 = inlined_call_operand.vmem [shape: f32[4,128], index: 4, kind: input, shape index: {}]   ;;  %s2449_s5 = inlined_call_operand.vmem [shape: f32[4,128], index: 5, kind: input, shape index: {}]   ;;  %s2450_s6 = inlined_call_operand.hbm [shape: f32[2,8,128], index: 6, kind: output, shape index: {0}]   ;;  %s2451_s7 = inlined_call_operand.hbm [shape: f32[2,8,128], index: 7, kind: output, shape index: {1}]   ;;  %s2452_s8 = inlined_call_operand.hbm [shape: f32[2,8,128], index: 8, kind: output, shape index: {2}]  }
   0x1   :  { %2462 = sst [smem:[#allocation31_spill]] %s2444_s0 }
   0x2   :  { %2463 = sst [smem:[#allocation32_spill]] %s2445_s1 }
   0x3   :  { %2464 = sst [smem:[#allocation33_spill]] %s2447_s3 }
   0x4   :  { %2465 = sst [smem:[#allocation34_spill]] %s2450_s6 }
   0x5   :  { %2466 = sst [smem:[#allocation35_spill]] %s2451_s7 }
   0x6   :  { %2467 = sst [smem:[#allocation36_spill]] %s2452_s8 }
   0x7   :  { %14 = vsyncpa [#allocation5], 0 }
   0x8   :  { %16 = vsyncpa [#allocation5 + $0x1], 0 }
   0x9   :  { %17 = vsyncpa [#allocation6], 0 }
   0xa   :  { %19 = vsyncpa [#allocation6 + $0x1], 0 }
   0xb   :  { %20 = vsyncpa [#allocation10], 0 }
   0xc   :  { %22 = vsyncpa [#allocation10 + $0x1], 0  ;;  %s1765_s27 = smov 0   ;;  %s1767_s28 = smov 0  }
   0xd   :  { %s1769_s29 = smov 0   ;;  %s1771_s30 = smov 0  }
   0xe   :  { %s1773_s9 = smov 0   ;;  %s1775_s10 = smov 0  }
   0xf   :  { %s1777_s11 = smov 0   ;;  %s1779_s12 = smov 0  }
  0x10   :  { %s1781_s13 = smov 0   ;;  %s1783_s14 = smov 0  }
  0x11   :  { %s1785_s15 = smov 0  }
  0x12 LB: > { %2468 = sst [smem:[#allocation18_spill]] %s1687_s10  ;;  %s1819_s16 = sadd.s32 4294967295, %s1707_s15   ;;  %s1707_s15 = sphi %s1785_s15, %s28_s15   ;;  %s1703_s14 = sphi %s1783_s14, %s2522_s14   ;;  %s1699_s13 = sphi %s1781_s13, %s2521_s13   ;;  %s1695_s12 = sphi %s1779_s12, %s2528_s12   ;;  %s1691_s11 = sphi %s1777_s11, %s2519_s11   ;;  %s1687_s10 = sphi %s1775_s10, %s2518_s10   ;;  %s1683_s9 = sphi %s1773_s9, %s2527_s9   ;;  %s1679_s30 = sphi %s1771_s30, %s2526_s30   ;;  %s1675_s29 = sphi %s1769_s29, %s2525_s29   ;;  %s1671_s28 = sphi %s1767_s28, %s2524_s28   ;;  %s1667_s27 = sphi %s1765_s27, %s2523_s27  }
  0x13   : > { %2469 = sst [smem:[#allocation19_spill]] %s1699_s13  ;;  %s37_s18 = sadd.s32 1, %s1699_s13 }
  0x14   : > { %2470 = sst [smem:[#allocation20_spill]] %s1703_s14  ;;  %s40_s19 = sadd.s32 1, %s1703_s14 }
  0x15   : > { %p38_p0 = scmp.ge.s32.totalorder %s37_s18, 2  ;;  %s1282_s20 = sshll.u32 %s1703_s14, 1 }
  0x16   : > { %s1826_s21 = sadd.s32 %s1699_s13, %s1282_s20  ;;  %s51_s22 = sadd.s32 1, %s1687_s10 }
  0x17   : > { %s2530_s18 = smov (%p38_p0, %s37_s18), 0  ;;  %s2532_s19 = smov (!%p38_p0, %s40_s19), %s1703_s14 }
  0x18   : > { %2471 = sst [smem:[#allocation21_spill]] %s2530_s18  ;;  %p58_p1 = scmp.ne.s32.totalorder %s1687_s10, %s1683_s9 }
  0x19   : > { %p59_p2 = scmp.eq.s32.totalorder %s1707_s15, 0  ;;  %p42_p3 = scmp.ge.s32.totalorder %s2532_s19, 2 }
  0x1a   : > { %p94_p4 = scmp.ne.s32.totalorder %s1683_s9, %s1679_s30  ;;  %p95_p6 = scmp.eq.s32.totalorder %s1819_s16, 0 }
  0x1b   : > { %p1836_p5 = por %p59_p2, %p58_p1  ;;  %s2534_s19 = smov (%p42_p3, %s2532_s19), 0 }
  0x1c   : > { %2473 = sst [smem:[#allocation22_spill]] %s2534_s19  ;;  %p1843_p7 = por %p95_p6, %p94_p4 }
  0x1d   : > { %s200_s25 = sadd.s32 1, %s1675_s29  ;;  %s1283_s26 = sshll.u32 %s2534_s19, 1 }
  0x1e   : > { %s197_s20 = ssub.s32 %s1703_s14, %s2534_s19  ;;  %s47_s30 = sadd.s32 %s1283_s26, %s2530_s18 }
  0x1f   : > { %p198_p8 = scmp.eq.s32.totalorder %s197_s20, 0  ;;  %s48_s17 = ssub.s32 %s1826_s21, %s47_s30 }
  0x20   : > { %p210_p9 = scmp.ne.s32.totalorder %s1675_s29, %s1671_s28  ;;  %p49_p10 = scmp.eq.s32.totalorder %s48_s17, 0 }
  0x21   : > { %p211_p11 = scmp.eq.s32.totalorder %s1819_s16, 3  ;;  %p216_p13 = scmp.ne.s32.totalorder %s1671_s28, %s1667_s27 }
  0x22   : > { %s1857_s13 = scalar_select %p198_p8, %s1675_s29, %s200_s25  }
  0x23   : > { %s1860_s8 = scalar_select %p49_p10, %s1687_s10, %s51_s22  }
  0x24   : > { %2475 = sst [smem:[#allocation23_spill]] %s1857_s13  ;;  %p1862_p12 = por %p211_p11, %p210_p9 }
  0x25   : > { %2476 = sst [smem:[#allocation24_spill]] %s1860_s8  ;;  %s2478_s7 = sadd.s32 4294967294, %s1707_s15  }
  0x26   : > { %p217_p0 = scmp.eq.s32.totalorder %s2478_s7, 3  ;;  %p1289_p2 = scmp.ge.s32.totalorder %s1707_s15, 4 }
  0x28   : > { %p1870_p1 = por %p217_p0, %p216_p13  ;;  %294 = sbr.rel (%p1289_p2) target bundleno = 82 (0x52), region = 28 }
  0x2f   : > { %297 = sbr.rel (!%p1836_p5) target bundleno = 61 (0x3d), region = 32  ;;  %s299_s17 = sand.u32 (%p1836_p5), 1, %s1687_s10  }
  0x30   : > { %s1321_s22 = sshll.u32 (%p1836_p5), %s1826_s21, 5  ;;  %s1290_s25 = sshll.u32 (%p1836_p5), %s299_s17, 6 }
  0x31   : > { %s2480_s0 = sld [smem:[#allocation31_spill]] (%p1836_p5)  ;;  %s301_s7 = scalar_lea.vmem (%p1836_p5), [#allocation3], %s1290_s25 }
  0x37   : > { %s306_s30 = scalar_lea.vmem %s2480_s0, %s1321_s22 }
  0x38   : > { %v348_v0 = vld [vmem:[%s306_s30] sm:$0xff]  ;;  %v350_v1 = vld [vmem:[%s306_s30 + $0x8] sm:$0xff]  ;;  %v352_v2 = vld [vmem:[%s306_s30 + $0x10] sm:$0xff] }
  0x39   : > { %349 = vst [vmem:[%s301_s7] sm:$0xff] %v348_v0  ;;  %351 = vst [vmem:[%s301_s7 + $0x8] sm:$0xff] %v350_v1  ;;  %v354_v3 = vld [vmem:[%s306_s30 + $0x18] sm:$0xff]  ;;  %v356_v4 = vld [vmem:[%s306_s30 + $0x80] sm:$0xff] }
  0x3a   : > { %353 = vst [vmem:[%s301_s7 + $0x10] sm:$0xff] %v352_v2  ;;  %v358_v5 = vld [vmem:[%s306_s30 + $0x88] sm:$0xff]  ;;  %355 = vst [vmem:[%s301_s7 + $0x18] sm:$0xff] %v354_v3  ;;  %v360_v6 = vld [vmem:[%s306_s30 + $0x90] sm:$0xff] }
  0x3b   : > { %357 = vst [vmem:[%s301_s7 + $0x20] sm:$0xff] %v356_v4  ;;  %359 = vst [vmem:[%s301_s7 + $0x28] sm:$0xff] %v358_v5  ;;  %v362_v7 = vld [vmem:[%s306_s30 + $0x98] sm:$0xff] }
  0x3c   : > { %361 = vst [vmem:[%s301_s7 + $0x30] sm:$0xff] %v360_v6  ;;  %363 = vst [vmem:[%s301_s7 + $0x38] sm:$0xff] %v362_v7 }
  0x3d PF: > { %s1883_s17 = sand.u32 1, %s1687_s10   ;;  %s1322_s25 = sshll.u32 %s1826_s21, 8 }
  0x3e   : > { %s1294_s22 = sshll.u32 %s1883_s17, 5  ;;  %s2481_s1 = sld [smem:[#allocation32_spill]] }
  0x3f   : > { %s1349_s26 = scalar_select %p1836_p5, [#allocation0], [#allocation14] }
  0x40   : > { %s374_s19 = scalar_lea.vmem [#allocation4], %s1294_s22  ;;  %s1709_s14 = smov 1024  }
  0x41   : > { %s387_s0 = sld [smem:[%s1349_s26]]   ;;  %s395_s18 = sshll.u32 %s374_s19, 4  ;;  %s396_s18 = int_to_ptr.vmem [resolvable:$true] %s395_s18 }
  0x42   : > { %1350 = sst [smem:[#allocation13]] (%p1836_p5), %s1709_s14  ;;  %s1710_s8 = smov 256  }
  0x43   : > { %1351 = sst [smem:[#allocation13 + $0x1]] (%p1836_p5), %s1710_s8  ;;  %s1711_s10 = smov 4  }
  0x44   : > { %s382_s7 = scalar_lea.hbm %s2481_s1, %s1322_s25  ;;  %1352 = sst [smem:[#allocation13 + $0x2]] (%p1836_p5), %s1711_s10 }
  0x45   : > { %s1712_s13 = smov 64   ;;  %1355 = sst [smem:[#allocation13 + $0x5]] (%p1836_p5), %s1711_s10 }
  0x46   : > { %1353 = sst [smem:[#allocation13 + $0x3]] (%p1836_p5), %s1712_s13  ;;  %s371_s22 = scalar_lea.sflag [#allocation5], %s1883_s17 }
  0x47   : > { %1354 = sst [smem:[#allocation13 + $0x4]] (%p1836_p5), %s1712_s13  ;;  %s1298_s25 = sshll.u32 %s387_s0, 26 }
  0x48   : > { %s1299_s19 = sadd.s32 134217728, %s1298_s25  ;;  %s1713_s26 = smov [#allocation12]  }
  0x49   : > { %1356 = dma.general (%p1836_p5), %s382_s7, 512, %s396_s18, %s371_s22, %s1713_s26, [#allocation13], %s1299_s19, 0  }
  0x4a   : > { %417 = sbr.rel (!%p1836_p5) target bundleno = 82 (0x52), region = 74  ;;  %s1300_s8 = sshll.u32 (%p1836_p5), %s1883_s17, 6 }
  0x4b   : > { %s1323_s14 = sshll.u32 (%p1836_p5), %s1826_s21, 5  ;;  %s421_s0 = scalar_lea.vmem (%p1836_p5), [#allocation7], %s1300_s8 }
  0x4c   : > { %s426_s1 = scalar_lea.vmem (%p1836_p5), %s2446_s2, %s1323_s14 }
  0x4d   : > { %v468_v8 = vld [vmem:[%s426_s1] sm:$0xff] (%p1836_p5)  ;;  %v470_v9 = vld [vmem:[%s426_s1 + $0x8] sm:$0xff] (%p1836_p5)  ;;  %v472_v10 = vld [vmem:[%s426_s1 + $0x10] sm:$0xff] (%p1836_p5) }
  0x4e   : > { %469 = vst [vmem:[%s421_s0] sm:$0xff] (%p1836_p5), %v468_v8  ;;  %471 = vst [vmem:[%s421_s0 + $0x8] sm:$0xff] (%p1836_p5), %v470_v9  ;;  %v474_v11 = vld [vmem:[%s426_s1 + $0x18] sm:$0xff] (%p1836_p5)  ;;  %v476_v12 = vld [vmem:[%s426_s1 + $0x80] sm:$0xff] (%p1836_p5) }
  0x4f   : > { %473 = vst [vmem:[%s421_s0 + $0x10] sm:$0xff] (%p1836_p5), %v472_v10  ;;  %v478_v13 = vld [vmem:[%s426_s1 + $0x88] sm:$0xff] (%p1836_p5)  ;;  %475 = vst [vmem:[%s421_s0 + $0x18] sm:$0xff] (%p1836_p5), %v474_v11  ;;  %v480_v14 = vld [vmem:[%s426_s1 + $0x90] sm:$0xff] (%p1836_p5) }
  0x50   : > { %477 = vst [vmem:[%s421_s0 + $0x20] sm:$0xff] (%p1836_p5), %v476_v12  ;;  %479 = vst [vmem:[%s421_s0 + $0x28] sm:$0xff] (%p1836_p5), %v478_v13  ;;  %v482_v15 = vld [vmem:[%s426_s1 + $0x98] sm:$0xff] (%p1836_p5) }
  0x51   : > { %481 = vst [vmem:[%s421_s0 + $0x30] sm:$0xff] %v480_v14  ;;  %483 = vst [vmem:[%s421_s0 + $0x38] sm:$0xff] %v482_v15 }
  0x52 PF: > { %p1304_p3 = scmp.ge.s32.totalorder %s1707_s15, 1  ;;  %p488_p4 = scmp.lt.s32.totalorder %s1707_s15, 5 }
  0x54   : > { %p489_p5 = pnand %p1304_p3, %p488_p4 }
  0x56   : > { %492 = sbr.rel (%p489_p5) target bundleno = 823 (0x337), region = 112 }
  0x5d   : > { %s495_s10 = sand.u32 1, %s1683_s9  }
  0x5e   : > { %s1305_s13 = sshll.u32 %s495_s10, 6  ;;  %s1306_s18 = sshll.u32 %s495_s10, 5 }
  0x5f   : > { %s1917_s21 = scalar_lea.vmem [#allocation3], %s1305_s13  ;;  %s502_s23 = scalar_lea.sflag [#allocation5], %s495_s10 }
  0x60   : > { %s1919_s17 = scalar_lea.vmem [#allocation4], %s1306_s18 }
  0x61   : > { %1654 = dma.done.wait (%p1843_p7), %s502_s23, 512  }
  0x62   : > { %1656 = vsyncadd (%p1843_p7), %s502_s23, 4294966784  ;;  %s546_s1 = sand.u32 1, %s1671_s28   ;;  %p572_p6 = scmp.eq.s32.totalorder %s1691_s11, 0 }
  0x63   : > { %s1928_s7 = sshll.u32 %s546_s1, 3  ;;  %s1931_s25 = scalar_lea.vmem [#allocation7], %s1305_s13 }
  0x64   : > { %s548_s19 = scalar_lea.vmem [#allocation8], %s1928_s7  ;;  %s1935_s22 = scalar_lea.vmem [#allocation9], %s1928_s7 }
  0x65   : > { %s1938_s26 = scalar_lea.vmem [#allocation11], %s1928_s7  ;;  %p1311_p7 = scmp.ne.s32.totalorder %s1691_s11, 0 }
  0x66   : > { %v1714_v16 = vmov (!%p1311_p7), 0.0  }
  0x67   : > { %575 = sbr.rel (%p1311_p7) target bundleno = 110 (0x6e), region = 128  ;;  %576 = vst [vmem:[#allocation2] sm:$0x1] (!%p1311_p7), %v1714_v16  ;;  %577 = vst [vmem:[#allocation2 + $0x1] sm:$0x1] (!%p1311_p7), %v1714_v16 }
  0x6e PF: > { %p578_p8 = scmp.ne.s32.totalorder %s1695_s12, 0 }
  0x70   : > { %p579_p9 = pnand %p578_p8, %p572_p6 }
  0x71   : > { %v1715_v17 = vmov (!%p579_p9), 0.0  }
  0x72   : > { %582 = sbr.rel (%p579_p9) target bundleno = 121 (0x79), region = 132  ;;  %583 = vst [vmem:[%s1935_s22] sm:$0xff] (!%p579_p9), %v1715_v17  ;;  %584 = vst [vmem:[%s1938_s26] sm:$0xff] (!%p579_p9), %v1715_v17 }
  0x79 PF: > { %p585_p10 = scmp.eq.s32.totalorder %s1695_s12, 0 }
  0x7b   : > { %p586_p11 = pnand %p585_p10, %p572_p6 }
  0x7c   : > { %v590_v18 = vld [vmem:[%s2448_s4] sm:$0xf] (!%p586_p11)  ;;  %vm594_vm0 = vcmask (!%p586_p11), 1043456   ;;  %vm654_vm1 = vcmask (!%p586_p11), 1040384  }
  0x7d   : > { %589 = sbr.rel (%p586_p11) target bundleno = 370 (0x172), region = 136  ;;  %v591_v19 = vld [vmem:[%s2449_s5] sm:$0xf] (!%p586_p11)  ;;  %v605_v21 = vmul.f32 (!%p586_p11), 0.5, %v590_v18 }
  0x7e   : > { %v592_v20 = vsub.f32 (!%p586_p11), %v590_v18, %v591_v19  ;;  %v611_v22 = vmul.f32 (!%p586_p11), 0.5, %v591_v19 }
  0x7f   : > { %v607_v24 = vrot.slane (!%p586_p11), %v605_v21, 2 }
  0x80   : > { %v593_v23 = vand.u32 (!%p586_p11), 2147483647, %v592_v20  ;;  %v613_v25 = vrot.slane (!%p586_p11), %v611_v22, 2 }
  0x81   : > { %v609_v27 = vsub.f32 (!%p586_p11), %v590_v18, %v607_v24  ;;  %v610_v28 = vadd.f32 (!%p586_p11), %v607_v24, %v590_v18 }
  0x82   : > { %v595_v26 = vsel (!%p586_p11), %vm594_vm0, %v593_v23, 0.0  ;;  %v615_v29 = vsub.f32 (!%p586_p11), %v591_v19, %v613_v25  ;;  %v616_v30 = vadd.f32 (!%p586_p11), %v613_v25, %v591_v19 }
  0x83   : > { %596 = vadd.xlane.f32.xlu0 (!%p586_p11), %v595_v26  ;;  %v617_v31 = vsub.f32 (!%p586_p11), %v610_v28, %v609_v27 }
  0x84   : > { %v628_v32 = vmax.f32 %v609_v27, %v615_v29  ;;  %v641_v33 = vmin.f32 %v609_v27, %v615_v29  ;;  %v622_v34 = vsub.f32 %v616_v30, %v615_v29  ;;  %v627_v35 = vmin.f32 %v610_v28, %v616_v30 }
  0x85   : > { %v640_v36 = vmax.f32 %v610_v28, %v616_v30  ;;  %v619_v37 = vrot.slane %v617_v31, 1 }
  0x86   : > { %v624_v38 = vrot.slane %v622_v34, 1  ;;  %v629_v39 = vsub.f32 %v627_v35, %v628_v32 }
  0x87   : > { %v642_v40 = vsub.f32 %v640_v36, %v641_v33  ;;  %v621_v41 = vmul.f32 %v619_v37, %v617_v31 }
  0x88   : > { %v626_v42 = vmul.f32 %v624_v38, %v622_v34  ;;  %v630_v43 = vmax.f32 %v629_v39, 0.0 }
  0x89   : > { %v643_v44 = vmax.f32 %v642_v40, 0.0 }
  0x8a   : > { %v632_v45 = vrot.slane %v630_v43, 1  ;;  %v635_v46 = vadd.f32 %v626_v42, %v621_v41 }
  0x8b   : > { %v645_v47 = vrot.slane %v643_v44, 1 }
  0x8c   : > { %v634_v48 = vmul.f32 %v632_v45, %v630_v43 }
  0x8d   : > { %v647_v49 = vmul.f32 %v645_v47, %v643_v44 }
  0x8e   : > { %v636_v50 = vsub.f32 %v635_v46, %v634_v48 }
  0x8f   : > { %v648_v51 = vmax.f32 %v647_v49, 1e-07 }
  0x90   : > { %v637_v52 = vmax.f32 %v636_v50, 1e-07 }
  0x91   : > { %1471 = vrcp.f32 %v648_v51 }
  0x92   : > { %1473 = vrcp.f32 %v637_v52  ;;  %v649_v53 = vsub.f32 %v648_v51, %v637_v52 }
  0x9b   : > { %v1472_v54 = vpop.eup %1471 }
  0x9c   : > { %v651_v55 = vmul.f32 %v1472_v54, %v649_v53  ;;  %v1474_v56 = vpop.eup %1473 }
  0x9d   : > { %v639_v57 = vmul.f32 %v1474_v56, %v634_v48 }
  0x9f   : > { %v652_v58 = vsub.f32 %v639_v57, %v651_v55 }
  0xa1   : > { %v653_v59 = vsub.f32 1.0, %v652_v58 }
  0xa3   : > { %v655_v60 = vsel %vm654_vm1, %v653_v59, 0.0 }
  0xa4   : > { %656 = vadd.xlane.f32.xlu0 %v655_v60 }
 0x110   : > { %v597_v61 = vpop.xlane.xlu0 %596 }
 0x111   : > { %v598_v62 = vrot.slane %v597_v61, 4 }
 0x113   : > { %v599_v63 = vadd.f32 %v598_v62, %v597_v61 }
 0x115   : > { %v600_v0 = vrot.slane %v599_v63, 2 }
 0x117   : > { %v601_v1 = vadd.f32 %v600_v0, %v599_v63 }
 0x119   : > { %v602_v2 = vrot.slane %v601_v1, 1 }
 0x11b   : > { %v603_v3 = vadd.f32 %v602_v2, %v601_v1 }
 0x11d   : > { %1343 = vpush %v603_v3 }
 0x131   : > { %v657_v4 = vpop.xlane.xlu0 %656 }
 0x132   : > { %v658_v5 = vrot.slane %v657_v4, 4 }
 0x134   : > { %v659_v6 = vadd.f32 %v658_v5, %v657_v4 }
 0x136   : > { %v660_v7 = vrot.slane %v659_v6, 2 }
 0x138   : > { %v661_v8 = vadd.f32 %v660_v7, %v659_v6 }
 0x13a   : > { %v662_v9 = vrot.slane %v661_v8, 1 }
 0x13c   : > { %v663_v10 = vadd.f32 %v662_v9, %v661_v8 }
 0x13e   : > { %1345 = vpush %v663_v10 }
 0x14e   : > { %s1344_s30 = spop %1343 }
 0x14f   : > { %v665_v11 = vstv %s1344_s30 }
 0x150   : > { %666 = vst [vmem:[%s1935_s22] sm:$0xff] %v665_v11 }
 0x16f   : > { %s1346_s0 = spop %1345 }
 0x170   : > { %v667_v12 = vstv %s1346_s0 }
 0x171   : > { %668 = vst [vmem:[%s1938_s26] sm:$0xff] %v667_v12 }
 0x172 PF: > { %v697_v13 = vld [vmem:[%s1931_s25 + $0x20] sm:$0xff]  ;;  %v1716_v15 = vmov 0   ;;  %v698_v16 = vld [vmem:[%s1931_s25 + $0x28] sm:$0xff]  ;;  %v699_v18 = vld [vmem:[%s1931_s25 + $0x30] sm:$0xff]  ;;  %p1312_p13 = scmp.ne.s32.totalorder %s1691_s11, 1 }
 0x173   : > { %v693_v14 = vld [vmem:[%s1931_s25] sm:$0xff]  ;;  %1476 = vset.pattern.permute.xlu1 %v1716_v15  ;;  %1475 = vset.pattern.permute.xlu0 %v1716_v15  ;;  %v694_v17 = vld [vmem:[%s1931_s25 + $0x8] sm:$0xff]  ;;  %v695_v19 = vld [vmem:[%s1931_s25 + $0x10] sm:$0xff]  ;;  %s2510_s18 = sld [smem:[#allocation33_spill]] (!%p1312_p13) }
 0x174   : > { %963 = vperm.xlu1 %1476, %v697_v13   ;;  %943 = vperm.xlu0 %1475, %v693_v14   ;;  %v700_v20 = vld [vmem:[%s1931_s25 + $0x38] sm:$0xff]  ;;  %v1966_v22 = vld [vmem:[%s1917_s21 + $0x20] sm:$0xff]  ;;  %v1969_v23 = vld [vmem:[%s1917_s21 + $0x28] sm:$0xff] }
 0x175   : > { %v696_v21 = vld [vmem:[%s1931_s25 + $0x18] sm:$0xff]  ;;  %v1972_v24 = vld [vmem:[%s1917_s21 + $0x8] sm:$0xff]  ;;  %v705_v25 = vand.u32 2147483647, %v1966_v22  ;;  %v1976_v26 = vld [vmem:[%s1917_s21] sm:$0xff]  ;;  %v737_v60 = vmax.f32 %v1966_v22, 0.0 }
 0x176   : > { %v706_v27 = vand.u32 2147483647, %v1969_v23  ;;  %v702_v28 = vand.u32 2147483647, %v1972_v24  ;;  %v1981_v29 = vld [vmem:[%s1917_s21 + $0x30] sm:$0xff]  ;;  %v1989_v36 = vld [vmem:[%s1917_s21 + $0x38] sm:$0xff] }
 0x177   : > { %v713_v30 = vsub.f32 0.0, %v705_v25  ;;  %v701_v31 = vand.u32 2147483647, %v1976_v26  ;;  %v1985_v32 = vld [vmem:[%s1917_s21 + $0x10] sm:$0xff]  ;;  %v707_v35 = vand.u32 2147483647, %v1981_v29 }
 0x178   : > { %968 = vperm.xlu1 %1476, %v698_v16   ;;  %948 = vperm.xlu0 %1475, %v694_v17   ;;  %v714_v33 = vsub.f32 0.0, %v706_v27  ;;  %v710_v34 = vsub.f32 0.0, %v702_v28  ;;  %v703_v37 = vand.u32 2147483647, %v1985_v32  ;;  %v1993_v38 = vld [vmem:[%s1917_s21 + $0x18] sm:$0xff]  ;;  %v1341_v54 = vld [vmem:[%s1919_s17 + $0x10] sm:$0xff]  }
 0x179   : > { %v725_v39 = vmul.f32 1.442695, %v713_v30  ;;  %v709_v40 = vsub.f32 0.0, %v701_v31  ;;  %v708_v42 = vand.u32 2147483647, %v1989_v36  ;;  %v715_v44 = vsub.f32 0.0, %v707_v35 }
 0x17a   : > { %v727_v41 = vmul.f32 1.442695, %v714_v33  ;;  %v719_v43 = vmul.f32 1.442695, %v710_v34  ;;  %v704_v45 = vand.u32 2147483647, %v1993_v38  ;;  %v2003_v58 = vunpack.c.l.bf16 %v1341_v54 }
 0x17b   : > { %v711_v46 = vsub.f32 0.0, %v703_v37  ;;  %1477 = vpow2.f32 %v725_v39  ;;  %v717_v47 = vmul.f32 1.442695, %v709_v40  ;;  %v716_v48 = vsub.f32 0.0, %v708_v42  ;;  %v1325_v55 = vld [vmem:[%s1919_s17] sm:$0xff]   ;;  %v1342_v15 = vld [vmem:[%s1919_s17 + $0x18] sm:$0xff]  }
 0x17c   : > { %973 = vperm.xlu1 %1476, %v699_v18   ;;  %953 = vperm.xlu0 %1475, %v695_v19   ;;  %1479 = vpow2.f32 %v727_v41  ;;  %v729_v49 = vmul.f32 1.442695, %v715_v44  ;;  %v712_v50 = vsub.f32 0.0, %v704_v45  ;;  %v2008_v61 = vunpack.c.l.bf16 %v1325_v55  ;;  %v2055_v27 = vld [vmem:[%s1919_s17 + $0x8] sm:$0xff]  }
 0x17d   : > { %1481 = vpow2.f32 %v719_v43  ;;  %v721_v51 = vmul.f32 1.442695, %v711_v46  ;;  %v731_v52 = vmul.f32 1.442695, %v716_v48  ;;  %v745_v62 = vmul.f32 %v2003_v58, %v1966_v22 }
 0x17e   : > { %1483 = vpow2.f32 %v717_v47  ;;  %v723_v53 = vmul.f32 1.442695, %v712_v50  ;;  %v733_v0 = vmax.f32 %v1976_v26, 0.0  ;;  %v2014_v1 = vunpack.c.h.bf16 %v1341_v54 }
 0x17f   : > { %1485 = vpow2.f32 %v729_v49  ;;  %v913_v3 = vmul.f32 -0.5, %v2003_v58  ;;  %v741_v4 = vmul.f32 %v2008_v61, %v1976_v26  ;;  %v909_v5 = vmul.f32 -0.5, %v2008_v61 }
 0x180   : > { %978 = vperm.xlu1 %1476, %v700_v20   ;;  %958 = vperm.xlu0 %1475, %v696_v21   ;;  %1487 = vpow2.f32 %v721_v51  ;;  %v738_v7 = vmax.f32 %v1969_v23, 0.0  ;;  %v746_v8 = vmul.f32 %v2014_v1, %v1969_v23  ;;  %v914_v11 = vmul.f32 -0.5, %v2014_v1 }
 0x181   : > { %1489 = vpow2.f32 %v731_v52  ;;  %v2034_v13 = vsub.f32 %v737_v60, %v745_v62  ;;  %v2038_v16 = vadd.f32 0.75, %v913_v3  ;;  %v2040_v17 = vsub.f32 %v733_v0, %v741_v4 }
 0x182   : > { %1491 = vpow2.f32 %v723_v53  ;;  %v2042_v18 = vadd.f32 0.75, %v909_v5  ;;  %v2046_v20 = vsub.f32 %v738_v7, %v746_v8  ;;  %v2048_v21 = vunpack.c.h.bf16 %v1325_v55 }
 0x183   : > { %2482 = vst [vmem:[#allocation25_spill] sm:$0xff] %v2034_v13  ;;  %2483 = vst [vmem:[#allocation26_spill] sm:$0xff] %v2040_v17  ;;  %v2059_v30 = vadd.f32 0.75, %v914_v11  ;;  %v734_v31 = vmax.f32 %v1972_v24, 0.0  ;;  %v2062_v33 = vunpack.c.l.bf16 %v1342_v15  ;;  %v739_v39 = vmax.f32 %v1981_v29, 0.0 }
 0x184   : > { %v742_v35 = vmul.f32 %v2048_v21, %v1972_v24  ;;  %v910_v37 = vmul.f32 -0.5, %v2048_v21  ;;  %v2074_v41 = vunpack.c.l.bf16 %v2055_v27  ;;  %vm857_vm2 = vcmp.ge.f32.partialorder %v1966_v22, 0.0 }
 0x185   : > { %v1999_v56 = vpop.eup %1477  ;;  %v747_v40 = vmul.f32 %v2062_v33, %v1981_v29  ;;  %v915_v46 = vmul.f32 -0.5, %v2062_v33  ;;  %v735_v47 = vmax.f32 %v1985_v32, 0.0  ;;  %vm858_vm3 = vcmp.ge.f32.partialorder %v1969_v23, 0.0 }
 0x186   : > { %v2001_v57 = vpop.eup %1479  ;;  %v793_v63 = vadd.f32 1.0, %v1999_v56  ;;  %v796_v43 = vmul.f32 -0.5, %v1999_v56  ;;  %v743_v48 = vmul.f32 %v2074_v41, %v1985_v32  ;;  %v2093_v50 = vsub.f32 %v734_v31, %v742_v35 }
 0x187   : > { %v2005_v59 = vpop.eup %1481  ;;  %v802_v6 = vadd.f32 1.0, %v2001_v57  ;;  %v805_v49 = vmul.f32 -0.5, %v2001_v57  ;;  %vm854_vm4 = vcmp.ge.f32.partialorder %v1972_v24, 0.0  ;;  %v2096_v51 = vadd.f32 0.75, %v910_v37 }
 0x188   : > { %v2016_v2 = vpop.eup %1483  ;;  %v2027_v9 = vadd.f32 1.0, %v2005_v59  ;;  %1493 = vrcp.f32 %v793_v63  ;;  %v2098_v52 = vsub.f32 %v739_v39, %v747_v40  ;;  %v911_v53 = vmul.f32 -0.5, %v2074_v41 }
 0x189   : > { %v2029_v10 = vpop.eup %1485  ;;  %v757_v14 = vadd.f32 1.0, %v2016_v2  ;;  %1495 = vrcp.f32 %v802_v6  ;;  %v760_v44 = vmul.f32 -0.5, %v2016_v2  ;;  %v797_v55 = vadd.f32 1.0, %v796_v43 }
 0x18a   : > { %v2032_v12 = vpop.eup %1487  ;;  %1497 = vrcp.f32 %v2027_v9  ;;  %v2052_v25 = vadd.f32 1.0, %v2029_v10  ;;  %2484 = vst [vmem:[#allocation27_spill] sm:$0xff] %v2098_v52  ;;  %vm853_vm5 = vcmp.ge.f32.partialorder %v1976_v26, 0.0  ;;  %v2103_v62 = vunpack.c.h.bf16 %v1342_v15 }
 0x18b   : > { %v2044_v19 = vpop.eup %1489  ;;  %v2065_v34 = vadd.f32 1.0, %v2032_v12  ;;  %1499 = vrcp.f32 %v757_v14  ;;  %v761_v60 = vadd.f32 1.0, %v760_v44  ;;  %v808_v0 = vand.u32 2147483647, %v2001_v57 }
 0x18c   : > { %v2057_v28 = vpop.eup %1491  ;;  %1501 = vlog2.f32 %v793_v63  ;;  %v2077_v42 = vadd.f32 1.0, %v2044_v19  ;;  %v769_v3 = vmul.f32 -0.5, %v2005_v59  ;;  %v2108_v4 = vadd.f32 0.75, %v915_v46 }
 0x18d   : > { %1503 = vrcp.f32 %v2052_v25  ;;  %v2084_v45 = vadd.f32 1.0, %v2057_v28  ;;  %v2110_v5 = vsub.f32 %v735_v47, %v743_v48  ;;  %v806_v7 = vadd.f32 1.0, %v805_v49 }
 0x18e   : > { %1505 = vrcp.f32 %v2065_v34  ;;  %vm859_vm6 = vcmp.ge.f32.partialorder %v1981_v29, 0.0  ;;  %v740_v8 = vmax.f32 %v1989_v36, 0.0  ;;  %v748_v11 = vmul.f32 %v2103_v62, %v1989_v36 }
 0x18f   : > { %1507 = vlog2.f32 %v802_v6  ;;  %2485 = vst [vmem:[#allocation28_spill] sm:$0xff] %v2110_v5  ;;  %v799_v15 = vand.u32 2147483647, %v1999_v56  ;;  %v763_v35 = vand.u32 2147483647, %v2016_v2  ;;  %v814_v37 = vmul.f32 -0.5, %v2029_v10 }
 0x190   : > { %1509 = vrcp.f32 %v2077_v42  ;;  %vm855_vm7 = vcmp.ge.f32.partialorder %v1985_v32, 0.0  ;;  %v2125_v40 = vmul.f32 %v2016_v2, %v761_v60  ;;  %v2127_v43 = vadd.f32 0.75, %v911_v53 }
 0x191   : > { %1511 = vrcp.f32 %v2084_v45  ;;  %v916_v44 = vmul.f32 -0.5, %v2103_v62  ;;  %vm2130_vm8 = vcmp.lt.f32.partialorder %v808_v0, 0.0004427343  ;;  %v770_v49 = vadd.f32 1.0, %v769_v3 }
 0x192   : > { %v1494_v54 = vpop.eup %1493  ;;  %1513 = vlog2.f32 %v757_v14  ;;  %v2122_v14 = vmul.f32 %v1999_v56, %v797_v55  ;;  %v2140_v53 = vsub.f32 %v740_v8, %v748_v11  ;;  %vm860_vm9 = vcmp.ge.f32.partialorder %v1989_v36, 0.0 }
 0x193   : > { %v1496_v63 = vpop.eup %1495  ;;  %v865_v31 = vmul.f32 %v1494_v54, %v1999_v56  ;;  %v2137_v56 = vmul.f32 %v2001_v57, %v806_v7  ;;  %1515 = vlog2.f32 %v2027_v9  ;;  %v2144_v55 = vunpack.c.h.bf16 %v2055_v27 }
 0x194   : > { %v1498_v6 = vpop.eup %1497  ;;  %v866_v48 = vmul.f32 %v1496_v63, %v2001_v57  ;;  %2488 = vst [vmem:[#allocation29_spill] sm:$0xff] %v2140_v53  ;;  %v772_v17 = vand.u32 2147483647, %v2005_v59  ;;  %v815_v13 = vadd.f32 1.0, %v814_v37  ;;  %vm2150_vm10 = vcmp.lt.f32.partialorder %v799_v15, 0.0004427343 }
 0x195   : > { %v1500_v39 = vpop.eup %1499  ;;  %v862_v5 = vmul.f32 %v1498_v6, %v2005_v59  ;;  %v873_v0 = vsel %vm857_vm2, %v1494_v54, %v865_v31  ;;  %vm2154_vm11 = vcmp.lt.f32.partialorder %v763_v35, 0.0004427343  ;;  %v817_v27 = vand.u32 2147483647, %v2029_v10 }
 0x196   : > { %v1502_v46 = vpop.eup %1501  ;;  %v861_v3 = vmul.f32 %v1500_v39, %v2016_v2  ;;  %v2159_v8 = vadd.f32 0.75, %v916_v44  ;;  %v736_v22 = vmax.f32 %v1993_v38, 0.0  ;;  %v744_v2 = vmul.f32 %v2144_v55, %v1993_v38 }
 0x197   : > { %v1504_v52 = vpop.eup %1503  ;;  %v874_v11 = vsel %vm858_vm3, %v1496_v63, %v866_v48  ;;  %v2167_v15 = vmul.f32 %v2005_v59, %v770_v49  ;;  %v870_v31 = vsel %vm854_vm4, %v1498_v6, %v862_v5  ;;  %v2172_v44 = vmul.f32 0.6931472, %v1502_v46 }
 0x198   : > { %v1506_v60 = vpop.eup %1505  ;;  %2493 = vst [vmem:[#allocation30_spill] sm:$0xff] %v2159_v8  ;;  %v867_v35 = vmul.f32 %v1504_v52, %v2029_v10  ;;  %v881_v53 = vmul.f32 %v2003_v58, %v873_v0  ;;  %1517 = vlog2.f32 %v2052_v25  ;;  %v869_v23 = vsel %vm853_vm5, %v1500_v39, %v861_v3 }
 0x199   : > { %v1508_v57 = vpop.eup %1507  ;;  %v863_v8 = vmul.f32 %v1506_v60, %v2032_v12  ;;  %v2180_v59 = vmul.f32 %v2029_v10, %v815_v13  ;;  %vm856_vm12 = vcmp.ge.f32.partialorder %v1993_v38, 0.0  ;;  %v882_v5 = vmul.f32 %v2014_v1, %v874_v11 }
 0x19a   : > { %v1510_v54 = vpop.eup %1509  ;;  %v804_v63 = vmul.f32 0.6931472, %v1508_v57  ;;  %vm2184_vm13 = vcmp.lt.f32.partialorder %v772_v17, 0.0004427343  ;;  %v878_v25 = vmul.f32 %v2048_v21, %v870_v31  ;;  %v2189_v46 = vsub.f32 %v736_v22, %v744_v2 }
 0x19b   : > { %v1512_v37 = vpop.eup %1511  ;;  %v2192_v26 = vmul.f32 -0.5, %v2144_v55  ;;  %v889_v39 = vadd.f32 %v2003_v58, %v873_v0  ;;  %v875_v10 = vsel %vm859_vm6, %v1504_v52, %v867_v35  ;;  %v868_v13 = vmul.f32 %v1510_v54, %v2044_v19 }
 0x19c   : > { %v1514_v24 = vpop.eup %1513  ;;  %v864_v48 = vmul.f32 %v1512_v37, %v2057_v28  ;;  %v897_v17 = vadd.f32 %v881_v53, %v881_v53  ;;  %v877_v49 = vmul.f32 %v2008_v61, %v869_v23  ;;  %1519 = vlog2.f32 %v2065_v34 }
 0x19d   : > { %v871_v3 = vsel %vm855_vm7, %v1506_v60, %v863_v8  ;;  %v2203_v57 = vmul.f32 0.6931472, %v1514_v24  ;;  %v885_v22 = vadd.f32 %v2008_v61, %v869_v23  ;;  %v810_v29 = vsel %vm2130_vm8, %v2137_v56, %v804_v63  ;;  %v1516_v52 = vpop.eup %1515 }
 0x19e   : > { %v890_v58 = vadd.f32 %v2014_v1, %v874_v11  ;;  %v898_v0 = vadd.f32 %v882_v5, %v882_v5  ;;  %v886_v53 = vadd.f32 %v2048_v21, %v870_v31  ;;  %v894_v2 = vadd.f32 %v878_v25, %v878_v25 }
 0x19f   : > { %v883_v34 = vmul.f32 %v2062_v33, %v875_v10  ;;  %v879_v32 = vmul.f32 %v2074_v41, %v871_v3  ;;  %1521 = vlog2.f32 %v2077_v42  ;;  %v876_v61 = vsel %vm860_vm9, %v1510_v54, %v868_v13 }
 0x1a0   : > { %v872_v47 = vsel %vm856_vm12, %v1512_v37, %v864_v48  ;;  %v905_v56 = vsub.f32 %v889_v39, %v897_v17  ;;  %v893_v60 = vadd.f32 %v877_v49, %v877_v49  ;;  %v778_v1 = vmul.f32 -0.5, %v2032_v12 }
 0x1a1   : > { %1523 = vlog2.f32 %v2084_v45  ;;  %v801_v21 = vsel %vm2150_vm10, %v2122_v14, %v2172_v44  ;;  %v765_v36 = vsel %vm2154_vm11, %v2125_v40, %v2203_v57  ;;  %v2229_v42 = vadd.f32 %v810_v29, %v2046_v20 }
 0x1a2   : > { %v768_v38 = vmul.f32 0.6931472, %v1516_v52  ;;  %vm2231_vm14 = vcmp.lt.f32.partialorder %v817_v27, 0.0004427343  ;;  %v1518_v54 = vpop.eup %1517  ;;  %v906_v45 = vsub.f32 %v890_v58, %v898_v0  ;;  %v891_v11 = vadd.f32 %v2062_v33, %v875_v10 }
 0x1a3   : > { %v884_v31 = vmul.f32 %v2103_v62, %v876_v61  ;;  %v880_v35 = vmul.f32 %v2144_v55, %v872_v47  ;;  %v902_v37 = vsub.f32 %v886_v53, %v894_v2  ;;  %v899_v23 = vadd.f32 %v883_v34, %v883_v34 }
 0x1a4   : > { %v887_v63 = vadd.f32 %v2074_v41, %v871_v3  ;;  %v895_v24 = vadd.f32 %v879_v32, %v879_v32  ;;  %v929_v20 = vmul.f32 %v905_v56, %v905_v56  ;;  %v901_v5 = vsub.f32 %v885_v22, %v893_v60 }
 0x1a5   : > { %v779_v25 = vadd.f32 1.0, %v778_v1  ;;  %v823_v27 = vmul.f32 -0.5, %v2044_v19  ;;  %v774_v39 = vsel %vm2184_vm13, %v2167_v15, %v768_v38  ;;  %v813_v13 = vmul.f32 0.6931472, %v1518_v54 }
 0x1a6   : > { %v781_v33 = vand.u32 2147483647, %v2032_v12  ;;  %v787_v10 = vmul.f32 -0.5, %v2057_v28  ;;  %v1520_v48 = vpop.eup %1519  ;;  %v892_v17 = vadd.f32 %v2103_v62, %v876_v61  ;;  %v900_v49 = vadd.f32 %v884_v31, %v884_v31 }
 0x1a7   : > { %v888_v41 = vadd.f32 %v2144_v55, %v872_v47  ;;  %v896_v3 = vadd.f32 %v880_v35, %v880_v35  ;;  %v930_v22 = vmul.f32 %v906_v45, %v906_v45  ;;  %v926_v29 = vmul.f32 %v902_v37, %v902_v37 }
 0x1a8   : > { %v907_v58 = vsub.f32 %v891_v11, %v899_v23  ;;  %v903_v52 = vsub.f32 %v887_v63, %v895_v24  ;;  %v925_v0 = vmul.f32 %v901_v5, %v901_v5  ;;  %v780_v6 = vmul.f32 %v2032_v12, %v779_v25  ;;  %v1026_v5 = vld [vmem:[%s2510_s18 + $0x1] sm:$0x1] (!%p1312_p13) }
 0x1a9   : > { %v824_v15 = vadd.f32 1.0, %v823_v27  ;;  %v826_v53 = vand.u32 2147483647, %v2044_v19  ;;  %v1522_v2 = vpop.eup %1521  ;;  %v937_v34 = vmul.f32 %v929_v20, %v2038_v16  ;;  %v830_v32 = vadd.f32 %v774_v39, %v2093_v50 }
 0x1aa   : > { %v777_v62 = vmul.f32 0.6931472, %v1520_v48  ;;  %v788_v61 = vadd.f32 1.0, %v787_v10  ;;  %vm2251_vm15 = vcmp.lt.f32.partialorder %v781_v33, 0.0004427343  ;;  %v908_v1 = vsub.f32 %v892_v17, %v900_v49  ;;  %v2505_v33 = vld [vmem:[#allocation26_spill] sm:$0xff] }
 0x1ab   : > { %v1524_v56 = vpop.eup %1523  ;;  %v790_v12 = vand.u32 2147483647, %v2057_v28  ;;  %v904_v38 = vsub.f32 %v888_v41, %v896_v3  ;;  %v938_v54 = vmul.f32 %v930_v22, %v2059_v30  ;;  %v934_v45 = vmul.f32 %v926_v29, %v2096_v51  ;;  %v2506_v10 = vld [vmem:[#allocation27_spill] sm:$0xff]  ;;  %v2507_v17 = vld [vmem:[#allocation28_spill] sm:$0xff]  ;;  %v2508_v41 = vld [vmem:[#allocation30_spill] sm:$0xff] }
 0x1ac   : > { %v931_v16 = vmul.f32 %v907_v58, %v907_v58  ;;  %v927_v11 = vmul.f32 %v903_v52, %v903_v52  ;;  %v933_v50 = vmul.f32 %v925_v0, %v2042_v18  ;;  %v819_v31 = vsel %vm2231_vm14, %v2180_v59, %v813_v13  ;;  %v2504_v13 = vld [vmem:[#allocation25_spill] sm:$0xff] }
 0x1ad   : > { %v825_v35 = vmul.f32 %v2044_v19, %v824_v15  ;;  %vm2263_vm0 = vcmp.lt.f32.partialorder %v826_v53, 0.0004427343  ;;  %v783_v23 = vsel %vm2251_vm15, %v780_v6, %v777_v62  ;;  %v822_v30 = vmul.f32 0.6931472, %v1522_v2  ;;  %v2509_v29 = vld [vmem:[#allocation29_spill] sm:$0xff] }
 0x1ae   : > { %v786_v63 = vmul.f32 0.6931472, %v1524_v56  ;;  %v789_v51 = vmul.f32 %v2057_v28, %v788_v61  ;;  %v932_v18 = vmul.f32 %v908_v1, %v908_v1  ;;  %vm2270_vm1 = vcmp.lt.f32.partialorder %v790_v12, 0.0004427343 }
 0x1af   : > { %v920_v19 = vadd.f32 0.75, %v2192_v26  ;;  %v928_v59 = vmul.f32 %v904_v38, %v904_v38  ;;  %v939_v27 = vmul.f32 %v931_v16, %v2108_v4  ;;  %v935_v39 = vmul.f32 %v927_v11, %v2127_v43 }
 0x1b0   : > { %v833_v28 = vadd.f32 %v801_v21, %v2504_v13  ;;  %v829_v26 = vadd.f32 %v765_v36, %v2505_v33  ;;  %v835_v48 = vadd.f32 %v819_v31, %v2506_v10  ;;  %v831_v4 = vadd.f32 %v783_v23, %v2507_v17  ;;  %v990_v23 = vld [vmem:[#allocation2 + $0x1] sm:$0x1] }
 0x1b1   : > { %v828_v7 = vsel %vm2263_vm0, %v825_v35, %v822_v30  ;;  %v792_v14 = vsel %vm2270_vm1, %v789_v51, %v786_v63  ;;  %v940_v9 = vmul.f32 %v932_v18, %v2508_v41  ;;  %v936_v3 = vmul.f32 %v928_v59, %v920_v19  ;;  %v989_v30 = vld [vmem:[#allocation2] sm:$0x1] }
 0x1b2   : > { %v836_v58 = vadd.f32 %v828_v7, %v2509_v29  ;;  %v832_v52 = vadd.f32 %v792_v14, %v2189_v46  ;;  %v1025_v18 = vld [vmem:[%s2510_s18] sm:$0x1] (!%p1312_p13)  ;;  %vm1031_vm2 = vcmask (!%p1312_p13), 1040384  }
 0x1f3   : > { %v964_v55 = vpop.permute.xlu1 %963  ;;  %v944_v47 = vpop.permute.xlu0 %943 }
 0x1f4   : > { %v985_v49 = vmul.f32 %v964_v55, %v937_v34  ;;  %v981_v43 = vmul.f32 %v944_v47, %v933_v50 }
 0x1f6   : > { %v995_v0 = vmul.f32 %v985_v49, %v833_v28  ;;  %v991_v6 = vmul.f32 %v981_v43, %v829_v26 }
 0x1f7   : > { %v969_v24 = vpop.permute.xlu1 %968  ;;  %v949_v20 = vpop.permute.xlu0 %948 }
 0x1f8   : > { %v986_v8 = vmul.f32 %v969_v24, %v938_v54  ;;  %v982_v25 = vmul.f32 %v949_v20, %v934_v45 }
 0x1fa   : > { %v996_v40 = vmul.f32 %v986_v8, %v2229_v42  ;;  %v992_v57 = vmul.f32 %v982_v25, %v830_v32 }
 0x1fb   : > { %v974_v44 = vpop.permute.xlu1 %973  ;;  %v954_v21 = vpop.permute.xlu0 %953 }
 0x1fc   : > { %v987_v36 = vmul.f32 %v974_v44, %v939_v27  ;;  %v983_v22 = vmul.f32 %v954_v21, %v935_v39  ;;  %v1008_v62 = vadd.f32 %v996_v40, %v995_v0  ;;  %v999_v61 = vadd.f32 %v992_v57, %v991_v6 }
 0x1fe   : > { %v997_v15 = vmul.f32 %v987_v36, %v835_v48  ;;  %v993_v53 = vmul.f32 %v983_v22, %v831_v4 }
 0x1ff   : > { %v979_v2 = vpop.permute.xlu1 %978  ;;  %v959_v34 = vpop.permute.xlu0 %958 }
 0x200   : > { %v988_v56 = vmul.f32 %v979_v2, %v940_v9  ;;  %v984_v55 = vmul.f32 %v959_v34, %v936_v3  ;;  %v1009_v47 = vadd.f32 %v1008_v62, %v997_v15  ;;  %v1000_v60 = vadd.f32 %v999_v61, %v993_v53 }
 0x202   : > { %v998_v42 = vmul.f32 %v988_v56, %v836_v58  ;;  %v994_v32 = vmul.f32 %v984_v55, %v832_v52 }
 0x204   : > { %v1010_v1 = vadd.f32 %v1009_v47, %v998_v42  ;;  %v1001_v12 = vadd.f32 %v1000_v60, %v994_v32 }
 0x206   : > { %v1011_v38 = vrot.slane %v1010_v1, 4  ;;  %v1002_v54 = vrot.slane %v1001_v12, 4 }
 0x208   : > { %v1012_v45 = vadd.f32 %v1011_v38, %v1010_v1  ;;  %v1003_v46 = vadd.f32 %v1002_v54, %v1001_v12 }
 0x20a   : > { %v1013_v16 = vrot.slane %v1012_v45, 2  ;;  %v1004_v11 = vrot.slane %v1003_v46, 2 }
 0x20c   : > { %v1014_v50 = vadd.f32 %v1013_v16, %v1012_v45  ;;  %v1005_v31 = vadd.f32 %v1004_v11, %v1003_v46 }
 0x20e   : > { %v1015_v35 = vrot.slane %v1014_v50, 1  ;;  %v1006_v37 = vrot.slane %v1005_v31, 1  ;;  %1024 = sbr.rel (%p1312_p13) target bundleno = 751 (0x2ef), region = 140 }
 0x210   : > { %v1016_v63 = vadd.f32 %v1015_v35, %v1014_v50  ;;  %v1007_v51 = vadd.f32 %v1006_v37, %v1005_v31 }
 0x212   : > { %v1018_v24 = vadd.f32 %v1016_v63, %v990_v23  ;;  %v1017_v20 = vadd.f32 %v1007_v51, %v989_v30 }
 0x214   : > { %1020 = vst [vmem:[#allocation2 + $0x1] sm:$0x1] %v1018_v24  ;;  %1019 = vst [vmem:[#allocation2] sm:$0x1] %v1017_v20 }
 0x21b   : > { %v1027_v19 = vld [vmem:[#allocation2] sm:$0x1]  ;;  %v1028_v59 = vld [vmem:[#allocation2 + $0x1] sm:$0x1] }
 0x21c   : > { %v1029_v8 = vmul.f32 %v1027_v19, %v1025_v18  ;;  %v1030_v25 = vmul.f32 %v1028_v59, %v1026_v5 }
 0x21e   : > { %v1032_v27 = vsel %vm1031_vm2, %v1029_v8, 0.0  ;;  %v1033_v39 = vsel %vm1031_vm2, %v1030_v25, 0.0 }
 0x21f   : > { %v1034_v13 = vadd.f32 %v1033_v39, %v1032_v27 }
 0x221   : > { %1035 = vadd.xlane.f32.xlu0 %v1034_v13 }
 0x2ae   : > { %v1036_v28 = vpop.xlane.xlu0 %1035 }
 0x2af   : > { %v1037_v33 = vrot.slane %v1036_v28, 4 }
 0x2b1   : > { %v1038_v26 = vadd.f32 %v1037_v33, %v1036_v28 }
 0x2b3   : > { %v1039_v10 = vrot.slane %v1038_v26, 2 }
 0x2b5   : > { %v1040_v48 = vadd.f32 %v1039_v10, %v1038_v26 }
 0x2b7   : > { %v1041_v17 = vrot.slane %v1040_v48, 1 }
 0x2b9   : > { %v1042_v4 = vadd.f32 %v1041_v17, %v1040_v48 }
 0x2bb   : > { %1347 = vpush %v1042_v4 }
 0x2ec   : > { %s1348_s11 = spop %1347 }
 0x2ed   : > { %v1044_v49 = vstv %s1348_s11 }
 0x2ee   : > { %1045 = vst [vmem:[%s548_s19] sm:$0xff] %v1044_v49 }
 0x2ef PF: > { %s1051_s17 = sand.u32 1, %s1819_s16   ;;  %s2310_s25 = sshll.u32 %s1695_s12, 7 }
 0x2f0   : > { %s2511_s14 = sld [smem:[#allocation35_spill]]  ;;  %s1083_s0 = sshll.u32 %s1935_s22, 4  ;;  %s2319_s0 = int_to_ptr.vmem [resolvable:$true] %s1083_s0 }
 0x2f1   : > { %s2513_s21 = sld [smem:[#allocation34_spill]]  ;;  %s2327_s12 = scalar_lea.sflag [#allocation10], %s1051_s17 }
 0x2f2   : > { %s1525_s16 = scalar_lea.vmem %s2319_s0, 128  ;;  %s1717_s11 = smov [#allocation9]  }
 0x2f3   : > { %p1526_p0 = scmp.ne.s32.totalorder %s2319_s0, %s1525_s16  ;;  %s1529_s24 = sshll.u32 %s1717_s11, 4  ;;  %s1530_s24 = int_to_ptr.vmem [resolvable:$false] %s1529_s24 }
 0x2f4   : > { %s1531_s22 = scalar_lea.vmem %s1530_s24, 256  ;;  %p1532_p4 = scmp.lt.s32.totalorder %s2319_s0, %s1530_s24 }
 0x2f5   : > { %p1527_p2 = pnand %p1526_p0, %p1862_p12  ;;  %p1533_p5 = scmp.lt.s32.totalorder %s1531_s22, %s1525_s16 }
 0x2f6   : > { %s2512_s20 = smov %s2511_s14  ;;  %s2316_s30 = scalar_lea.hbm %s2511_s14, %s2310_s25 }
 0x2f7   : > { %s2325_s23 = scalar_lea.hbm %s2513_s21, %s2310_s25  ;;  %p1528_p3 = pneg %p1527_p2 }
 0x2f8   : > { %p1534_p6 = por %p1533_p5, %p1532_p4 }
 0x2fa   : > { %p1535_p7 = pnand %p1534_p6, %p1528_p3 }
 0x2fc   : > { %1538 = shalt.err (!%p1535_p7)
}
 0x2fd   : > { %s1539_s17 = scalar_lea.hbm %s2316_s30, 128  ;;  %s1543_s10 = scalar_lea.hbm %s2512_s20, 256 }
 0x2fe   : > { %p1540_p8 = scmp.ne.s32.totalorder %s2316_s30, %s1539_s17  ;;  %p1544_p11 = scmp.lt.u32.totalorder %s2316_s30, %s2512_s20 }
 0x2ff   : > { %p1545_p13 = scmp.lt.u32.totalorder %s1543_s10, %s1539_s17  ;;  %p1547_p2 = scmp.lt.u32.totalorder %s1539_s17, %s2316_s30 }
 0x300   : > { %p1541_p9 = pnand %p1540_p8, %p1862_p12 }
 0x301   : > { %p1546_p0 = por %p1545_p13, %p1544_p11 }
 0x302   : > { %p1542_p10 = pneg %p1541_p9 }
 0x303   : > { %p1548_p3 = por %p1547_p2, %p1546_p0 }
 0x305   : > { %p1549_p4 = pnand %p1548_p3, %p1542_p10 }
 0x307   : > { %1552 = shalt.err (!%p1549_p4)
}
 0x308   : > { %1359 = dma.vmem_to_hbm [thread:$0]  (%p1862_p12), %s2319_s0, 128, %s2316_s30, %s2327_s12  }
 0x309   : > { %s1070_s16 = sshll.u32 %s548_s19, 4  ;;  %s2514_s8 = sld [smem:[#allocation36_spill]]  ;;  %s2359_s16 = int_to_ptr.vmem [resolvable:$true] %s1070_s16 }
 0x30a   : > { %s1096_s14 = sshll.u32 %s1938_s26, 4  ;;  %s1047_s10 = scalar_lea.sflag [#allocation6], %s546_s1  ;;  %s1097_s14 = int_to_ptr.vmem [resolvable:$true] %s1096_s14 }
 0x30b   : > { %s1553_s13 = scalar_lea.vmem %s2359_s16, 128  ;;  %s1718_s7 = smov [#allocation8]  }
 0x30c   : > { %p1554_p5 = scmp.ne.s32.totalorder %s2359_s16, %s1553_s13  ;;  %s1557_s19 = sshll.u32 %s1718_s7, 4  ;;  %s1558_s19 = int_to_ptr.vmem [resolvable:$false] %s1557_s19 }
 0x30d   : > { %s1559_s30 = scalar_lea.vmem %s1558_s19, 256  ;;  %p1560_p8 = scmp.lt.s32.totalorder %s2359_s16, %s1558_s19 }
 0x30e   : > { %p1555_p6 = pnand %p1554_p5, %p1862_p12  ;;  %p1561_p9 = scmp.lt.s32.totalorder %s1559_s30, %s1553_s13 }
 0x30f   : > { %s2357_s17 = scalar_lea.hbm %s2514_s8, %s2310_s25 }
 0x310   : > { %p1556_p7 = pneg %p1555_p6  ;;  %p1562_p10 = por %p1561_p9, %p1560_p8 }
 0x312   : > { %p1563_p11 = pnand %p1562_p10, %p1556_p7 }
 0x314   : > { %1566 = shalt.err (!%p1563_p11)
}
 0x315   : > { %s1567_s1 = scalar_lea.hbm %s2325_s23, 128  ;;  %s1571_s11 = scalar_lea.hbm %s2513_s21, 256 }
 0x316   : > { %p1568_p13 = scmp.ne.s32.totalorder %s2325_s23, %s1567_s1  ;;  %p1572_p3 = scmp.lt.u32.totalorder %s2325_s23, %s2513_s21 }
 0x317   : > { %p1573_p4 = scmp.lt.u32.totalorder %s1571_s11, %s1567_s1  ;;  %p1575_p6 = scmp.lt.u32.totalorder %s1567_s1, %s2325_s23 }
 0x318   : > { %p1569_p0 = pnand %p1568_p13, %p1862_p12 }
 0x319   : > { %p1574_p5 = por %p1573_p4, %p1572_p3 }
 0x31a   : > { %p1570_p2 = pneg %p1569_p0 }
 0x31b   : > { %p1576_p7 = por %p1575_p6, %p1574_p5 }
 0x31d   : > { %p1577_p8 = pnand %p1576_p7, %p1570_p2 }
 0x31f   : > { %1580 = shalt.err (!%p1577_p8)
}
 0x320   : > { %1358 = dma.vmem_to_hbm [thread:$0]  (%p1862_p12), %s2359_s16, 128, %s2325_s23, %s1047_s10  }
 0x321   : > { %s1581_s13 = scalar_lea.vmem %s1097_s14, 128  ;;  %s1719_s7 = smov [#allocation11]  }
 0x322   : > { %p1582_p9 = scmp.ne.s32.totalorder %s1097_s14, %s1581_s13  ;;  %s1585_s19 = sshll.u32 %s1719_s7, 4  ;;  %s1586_s19 = int_to_ptr.vmem [resolvable:$false] %s1585_s19 }
 0x323   : > { %s1587_s30 = scalar_lea.vmem %s1586_s19, 256  ;;  %p1588_p13 = scmp.lt.s32.totalorder %s1097_s14, %s1586_s19 }
 0x324   : > { %p1583_p10 = pnand %p1582_p9, %p1862_p12  ;;  %p1589_p0 = scmp.lt.s32.totalorder %s1587_s30, %s1581_s13 }
 0x326   : > { %p1584_p11 = pneg %p1583_p10  ;;  %p1590_p2 = por %p1589_p0, %p1588_p13 }
 0x328   : > { %p1591_p3 = pnand %p1590_p2, %p1584_p11 }
 0x32a   : > { %1594 = shalt.err (!%p1591_p3)
}
 0x32b   : > { %s1595_s26 = scalar_lea.hbm %s2357_s17, 128  ;;  %s1599_s10 = scalar_lea.hbm %s2514_s8, 256 }
 0x32c   : > { %p1596_p4 = scmp.ne.s32.totalorder %s2357_s17, %s1595_s26  ;;  %p1600_p7 = scmp.lt.u32.totalorder %s2357_s17, %s2514_s8 }
 0x32d   : > { %p1601_p8 = scmp.lt.u32.totalorder %s1599_s10, %s1595_s26  ;;  %p1603_p10 = scmp.lt.u32.totalorder %s1595_s26, %s2357_s17 }
 0x32e   : > { %p1597_p5 = pnand %p1596_p4, %p1862_p12 }
 0x32f   : > { %p1602_p9 = por %p1601_p8, %p1600_p7 }
 0x330   : > { %p1598_p6 = pneg %p1597_p5 }
 0x331   : > { %p1604_p11 = por %p1603_p10, %p1602_p9 }
 0x333   : > { %p1605_p13 = pnand %p1604_p11, %p1598_p6 }
 0x335   : > { %1608 = shalt.err (!%p1605_p13)
}
 0x336   : > { %1360 = dma.vmem_to_hbm [thread:$0]  (%p1862_p12), %s1097_s14, 128, %s2357_s17, %s2327_s12  }
 0x337 PF: > { %p1374_p0 = scmp.ge.s32.totalorder %s1707_s15, 2  ;;  %s1108_s0 = sand.u32 1, %s1667_s27  }
 0x338   : > { %s1109_s11 = scalar_lea.sflag [#allocation6], %s1108_s0 }
 0x339   : > { %p1365_p2 = pnand %p1374_p0, %p1870_p1 }
 0x33b   : > { %1658 = dma.done.wait (!%p1365_p2), %s1109_s11, 128  }
 0x33c   : > { %1660 = vsyncadd (!%p1365_p2), %s1109_s11, 4294967168  ;;  %s2515_s24 = sadd.s32 4294967294, %s1707_s15  }
 0x33d   : > { %s1117_s22 = sand.u32 1, %s2515_s24  }
 0x33e   : > { %s1118_s13 = scalar_lea.sflag [#allocation10], %s1117_s22 }
 0x33f   : > { %1662 = dma.done.wait (!%p1365_p2), %s1118_s13, 256  }
 0x340   : > { %1664 = vsyncadd (!%p1365_p2), %s1118_s13, 4294967040  ;;  %s28_s15 = sadd.s32 1, %s1707_s15   ;;  %s2516_s6 = sld [smem:[#allocation23_spill]] }
 0x341   : > { %p25_p12 = scmp.ge.s32.totalorder %s28_s15, 6   ;;  %s2517_s12 = sld [smem:[#allocation18_spill]] }
 0x342   : > { %s2518_s10 = sld [smem:[#allocation24_spill]]  ;;  %s2519_s11 = sld [smem:[#allocation19_spill]] }
 0x343   : > { %s2520_s3 = sld [smem:[#allocation20_spill]]  ;;  %s2521_s13 = sld [smem:[#allocation21_spill]] }
 0x344   : > { %s2522_s14 = sld [smem:[#allocation22_spill]]  ;;  %s2523_s27 = smov %s1671_s28 }
 0x345   : > { %s2524_s28 = smov %s1675_s29  ;;  %s2526_s30 = smov %s1683_s9 }
 0x346   : > { %s2525_s29 = smov %s2516_s6  ;;  %27 = sbr.rel (!%p25_p12) target bundleno = 18 (0x12), region = 234 }
 0x347   : > { %s2527_s9 = smov %s2517_s12 }
 0x349   : > { %s2528_s12 = smov %s2520_s3 }
 0x34d   :  { %1132 = vsyncpa [#allocation5], 1 }
 0x34e   :  { %1134 = vsyncpa [#allocation5 + $0x1], 1 }
 0x34f   :  { %1135 = vsyncpa [#allocation6], 1 }
 0x350   :  { %1137 = vsyncpa [#allocation6 + $0x1], 1 }
 0x351   :  { %1138 = vsyncpa [#allocation10], 1 }
 0x352   :  { %1140 = vsyncpa [#allocation10 + $0x1], 1 }

</bundles_post_ra>
